<compile_context>
chip_gen: v5e
topology: v5e:2x2
jax: 0.10.0
libtpu: 0.0.40
codegen_flags: <defaults>
</compile_context>

<pallas_src>
from typing import Dict, List, Optional, Tuple, Union

import numpy as np
import jax
import jax.numpy as jnp
from jax import lax
from jax.experimental import pallas as pl
from jax.experimental.pallas import tpu as pltpu


def _round_up(x: int, m: int) -> int:
    return ((x + m - 1) // m) * m


# ----------------------------------------------------------------------------
# Fused 3-stage kernel: per grid step, a (bm, D0) slab of flattened NCHW input
# runs through three (matmul -> +bias -> ReLU) stages entirely on-chip.
#   x_ref  : (1, bm, D0)     bf16
#   a*_ref : (D_in, D_out)   bf16   conv-as-dense operator, BN scale folded in
#   b*_ref : (1, D_out)      f32    folded BN bias (broadcast over rows)
#   o*_ref : (1, bm, D_out)  f32
# ----------------------------------------------------------------------------
def _fused_backbone_kernel(x_ref, a0_ref, b0_ref, a1_ref, b1_ref, a2_ref, b2_ref,
                           o0_ref, o1_ref, o2_ref):
    def stage(h, a_ref, b_ref):
        y = jnp.dot(h, a_ref[...], preferred_element_type=jnp.float32)
        return jnp.maximum(y + b_ref[...], 0.0)

    h = x_ref[0]                                       # (bm, D0) bf16
    y0 = stage(h, a0_ref, b0_ref)                      # (bm, D1) f32
    y1 = stage(y0.astype(a1_ref.dtype), a1_ref, b1_ref)
    y2 = stage(y1.astype(a2_ref.dtype), a2_ref, b2_ref)
    o0_ref[0] = y0
    o1_ref[0] = y1
    o2_ref[0] = y2


def fused_backbone_forward(x, ops, *, compute_dtype=jnp.bfloat16):
    """x: (N, C, H, W) f32.  ops: list of 3 stage operators.  Returns 3 NCHW f32 maps."""
    n = x.shape[0]
    d0 = ops[0]["a"].shape[0]
    assert int(np.prod(x.shape[1:])) == d0
    x_flat = x.reshape(n, d0).astype(compute_dtype)    # pure reshape + bf16 cast

    # >=2 grid steps when N>=2 so the batch axis can shard across TensorCores (v7x),
    # while capping per-step rows for large N.
    bm = max(1, min(128, n // 2)) if n >= 2 else 1
    n_pad = _round_up(n, bm)
    if n_pad != n:
        x_flat = jnp.pad(x_flat, ((0, n_pad - n), (0, 0)))
    g = n_pad // bm
    x_blk = x_flat.reshape(g, bm, d0)

    douts = [op["a"].shape[1] for op in ops]
    in_specs = [pl.BlockSpec((1, bm, d0), lambda i: (i, 0, 0))]
    operands = [x_blk]
    for op in ops:
        # Constant block index -> Pallas fetches these weight slabs once (no per-step
        # re-DMA).  pipeline_mode=pl.Buffered(1) would also drop the second buffer,
        # but VMEM headroom is huge here so it is left at the default.
        in_specs.append(pl.BlockSpec(op["a"].shape, lambda i: (0, 0)))
        in_specs.append(pl.BlockSpec(op["b"].shape, lambda i: (0, 0)))
        operands.extend([op["a"], op["b"]])
    out_specs = tuple(pl.BlockSpec((1, bm, d), lambda i: (i, 0, 0)) for d in douts)
    out_shape = tuple(jax.ShapeDtypeStruct((g, bm, d), jnp.float32) for d in douts)

    flops = 2 * n_pad * sum(op["a"].shape[0] * op["a"].shape[1] for op in ops)
    bytes_accessed = (x_blk.size * x_blk.dtype.itemsize
                      + sum(op["a"].size * op["a"].dtype.itemsize for op in ops)
                      + sum(op["b"].size * 4 for op in ops)
                      + n_pad * sum(douts) * 4)

    outs = pl.pallas_call(
        _fused_backbone_kernel,
        out_shape=out_shape,
        grid=(g,),
        in_specs=in_specs,
        out_specs=out_specs,
        compiler_params=pltpu.CompilerParams(
            dimension_semantics=("parallel",)),
        cost_estimate=pl.CostEstimate(
            flops=flops, transcendentals=0, bytes_accessed=bytes_accessed),
    )(*operands)

    feats = []
    for y, op in zip(outs, ops):
        cout, ho, wo = op["out_chw"]
        y = y.reshape(n_pad, cout * ho * wo)
        if n_pad != n:
            y = y[:n]
        feats.append(y.reshape(n, cout, ho, wo))       # pure reshape: already NCHW order
    return feats


# ----------------------------------------------------------------------------
# Parameter construction (host side, trace-time constants)
# ----------------------------------------------------------------------------
def _make_stage_params(key, cin, cout, *, kh=3, kw=3, eps=1e-5):
    kw_, kg, kb, km, kv = jax.random.split(key, 5)
    w = 0.1 * jax.random.normal(kw_, (cout, cin, kh, kw), jnp.float32)
    gamma = 1.0 + 0.1 * jax.random.normal(kg, (cout,), jnp.float32)
    beta = 0.1 * jax.random.normal(kb, (cout,), jnp.float32)
    mean = 0.1 * jax.random.normal(km, (cout,), jnp.float32)
    var = jnp.abs(jax.random.normal(kv, (cout,), jnp.float32)) + 0.5
    scale = gamma / jnp.sqrt(var + eps)     # fold BatchNorm (eval mode): y = x*scale+bias
    bias = beta - mean * scale
    return dict(w=w, scale=scale, bias=bias, cout=cout)


def _build_stage_operator(w, scale, bias, hin, win, *, stride=2, pad=1,
                          compute_dtype=jnp.bfloat16):
    """Conv3x3(stride, pad) + folded BN scale as a dense (Cin*Hin*Win, Cout*Ho*Wo) matrix.

    The im2col gather is folded into the (BN-scaled) weights at build time, so the
    kernel never materializes a patch matrix and inter-stage data never leaves VMEM.
    """
    # TODO(synk): the dense operator scales as (Cin*Hin*Win)*(Cout*Ho*Wo); for large
    # spatial sizes the conv should instead use in-kernel shifted-window accumulation.
    cout, cin, kh, kw = w.shape
    ho = (hin + 2 * pad - kh) // stride + 1
    wo = (win + 2 * pad - kw) // stride + 1
    wf = np.asarray(w, np.float32) * np.asarray(scale, np.float32)[:, None, None, None]
    a = np.zeros((cin * hin * win, cout * ho * wo), np.float32)
    ci = np.arange(cin) * (hin * win)
    co = np.arange(cout) * (ho * wo)
    for ki in range(kh):
        for kj in range(kw):
            w_tap = wf[:, :, ki, kj].T                 # (Cin, Cout)
            for r in range(ho):
                hi = stride * r + ki - pad
                if hi < 0 or hi >= hin:
                    continue
                for c in range(wo):
                    wi = stride * c + kj - pad
                    if wi < 0 or wi >= win:
                        continue
                    a[np.ix_(ci + hi * win + wi, co + r * wo + c)] += w_tap
    b_row = np.repeat(np.asarray(bias, np.float32), ho * wo)[None, :]
    return dict(a=jnp.asarray(a, compute_dtype),       # bf16, BN scale folded (in f32)
                b=jnp.asarray(b_row, jnp.float32),
                out_chw=(cout, ho, wo))


# ----------------------------------------------------------------------------
# FeatureGraphNet
# ----------------------------------------------------------------------------
class FeatureGraphNet:
    """JAX/Pallas analogue of timm's FX FeatureGraphNet.

    The backbone is a concrete 3-stage CNN (conv3x3 s2 -> BN -> ReLU per stage).
    `out_indices` selects which stage outputs are returned, in order, matching the
    reference's `list(out.values())` / return_dict semantics.
    """

    def __init__(
        self,
        key,
        in_chs: int,
        out_indices: Tuple[int, ...] = (0, 1, 2),
        out_map: Optional[Union[Dict, List]] = None,
        output_fmt: str = "NCHW",
        return_dict: bool = False,
    ):
        assert output_fmt == "NCHW"
        if out_map is not None:
            assert len(out_map) == len(out_indices)
        # TODO(synk): torch.fx graph tracing (create_feature_extractor) has no Pallas
        # equivalent; the backbone stages are enumerated explicitly instead of traced.
        stage_chs = [in_chs, 8, 16, 32]
        keys = jax.random.split(key, len(stage_chs) - 1)
        self.in_chs = in_chs
        self.stages = [
            _make_stage_params(keys[i], stage_chs[i], stage_chs[i + 1])
            for i in range(len(stage_chs) - 1)
        ]
        self.out_indices = tuple(out_indices)
        self.out_map = out_map
        self.return_dict = return_dict
        self._op_cache = {}

    def _operators(self, hin, win):
        cache_key = (hin, win)
        if cache_key not in self._op_cache:
            ops, h_sp, w_sp = [], hin, win
            for p in self.stages:
                op = _build_stage_operator(p["w"], p["scale"], p["bias"], h_sp, w_sp)
                ops.append(op)
                _, h_sp, w_sp = op["out_chw"]
            self._op_cache[cache_key] = ops
        return self._op_cache[cache_key]

    def __call__(self, x):
        n, c, h, w = x.shape
        assert c == self.in_chs
        ops = self._operators(h, w)
        feats = fused_backbone_forward(x, ops)         # NCHW f32, one per stage
        selected = [feats[i] for i in self.out_indices]
        if self.return_dict:
            names = (
                list(self.out_map)
                if self.out_map is not None
                else [f"stage_{i}" for i in self.out_indices]
            )
            return dict(zip(names, selected))
        return selected


# Plain-JAX reference for one stage (used only for the numerical check).
def _reference_stage_nchw(x, w, scale, bias, *, stride=2, padding=1):
    y = lax.conv_general_dilated(
        x, w, (stride, stride), ((padding, padding), (padding, padding)),
        dimension_numbers=("NCHW", "OIHW", "NCHW"))
    y = y * scale[None, :, None, None] + bias[None, :, None, None]
    return jnp.maximum(y, 0.0)


if __name__ == "__main__":
    key = jax.random.PRNGKey(0)
    k_param, k_x = jax.random.split(key)

    net = FeatureGraphNet(k_param, in_chs=4, out_indices=(0, 1, 2), return_dict=False)

    x = jax.random.normal(k_x, (2, 4, 16, 16), jnp.float32)   # NCHW, like PyTorch
    outs = jax.jit(lambda xx: net(xx))(x)
    outs = jax.block_until_ready(outs)

    expected_shapes = [(2, 8, 8, 8), (2, 16, 4, 4), (2, 32, 2, 2)]
    assert [tuple(o.shape) for o in outs] == expected_shapes
    assert all(o.dtype == jnp.float32 for o in outs)
    assert all(bool(jnp.all(jnp.isfinite(o))) for o in outs)

    # Per-stage numerical check against a plain-JAX conv+BN+ReLU reference (each stage
    # fed the kernel's previous output -> no error compounding).  Loose tolerance
    # accounts for bf16 matmul operands.
    h_in = x
    for i, p in enumerate(net.stages):
        ref = _reference_stage_nchw(h_in, p["w"], p["scale"], p["bias"])
        assert bool(jnp.allclose(outs[i], ref, rtol=5e-2, atol=5e-2)), f"stage {i} mismatch"
        h_in = outs[i]

    print("KERNEL_OK")
</pallas_src>

<mosaic_0001>
module attributes {stable_mosaic.version = 11 : i64} {
  func.func @_fused_backbone_kernel(%arg0: i32, %arg1: memref<1x1x1024xbf16, #tpu.memory_space<vmem>>, %arg2: memref<1024x512xbf16, #tpu.memory_space<vmem>>, %arg3: memref<1x512xf32, #tpu.memory_space<vmem>>, %arg4: memref<512x256xbf16, #tpu.memory_space<vmem>>, %arg5: memref<1x256xf32, #tpu.memory_space<vmem>>, %arg6: memref<256x128xbf16, #tpu.memory_space<vmem>>, %arg7: memref<1x128xf32, #tpu.memory_space<vmem>>, %arg8: memref<1x1x512xf32, #tpu.memory_space<vmem>>, %arg9: memref<1x1x256xf32, #tpu.memory_space<vmem>>, %arg10: memref<1x1x128xf32, #tpu.memory_space<vmem>>) attributes {dimension_semantics = [#tpu.dimension_semantics<parallel>], iteration_bounds = array<i64: 2>, scalar_prefetch = 0 : i64, scratch_operands = 0 : i64, tpu.core_type = #tpu.core_type<tc>, window_params = [{transform_indices = @transform_0, window_bounds = array<i64: 1, 1, 1024>}, {pipeline_mode = #tpu.pipeline_mode<synchronous>, transform_indices = @transform_1, window_bounds = array<i64: 1024, 512>}, {pipeline_mode = #tpu.pipeline_mode<synchronous>, transform_indices = @transform_2, window_bounds = array<i64: 1, 512>}, {pipeline_mode = #tpu.pipeline_mode<synchronous>, transform_indices = @transform_3, window_bounds = array<i64: 512, 256>}, {pipeline_mode = #tpu.pipeline_mode<synchronous>, transform_indices = @transform_4, window_bounds = array<i64: 1, 256>}, {pipeline_mode = #tpu.pipeline_mode<synchronous>, transform_indices = @transform_5, window_bounds = array<i64: 256, 128>}, {pipeline_mode = #tpu.pipeline_mode<synchronous>, transform_indices = @transform_6, window_bounds = array<i64: 1, 128>}, {transform_indices = @transform_7, window_bounds = array<i64: 1, 1, 512>}, {transform_indices = @transform_8, window_bounds = array<i64: 1, 1, 256>}, {transform_indices = @transform_9, window_bounds = array<i64: 1, 1, 128>}]} {
    %c0 = arith.constant 0 : index
    %c0_0 = arith.constant 0 : index
    %c0_1 = arith.constant 0 : index
    %0 = vector.load %arg1[%c0, %c0_0, %c0_1] : memref<1x1x1024xbf16, #tpu.memory_space<vmem>>, vector<1x1x1024xbf16>
    %1 = vector.shape_cast %0 : vector<1x1x1024xbf16> to vector<1x1024xbf16>
    %c0_2 = arith.constant 0 : index
    %c0_3 = arith.constant 0 : index
    %2 = vector.load %arg2[%c0_2, %c0_3] : memref<1024x512xbf16, #tpu.memory_space<vmem>>, vector<1024x512xbf16>
    %cst = arith.constant dense<0.000000e+00> : vector<1x512xf32>
    %3 = tpu.matmul %1, %2, %cst {dimension_numbers = #tpu.dot_dimension_numbers<[1], [0], [0], [1], [0, 0, 1, 1], [], []>} : vector<1x1024xbf16>, vector<1024x512xbf16>, vector<1x512xf32> -> vector<1x512xf32>
    %c0_4 = arith.constant 0 : index
    %c0_5 = arith.constant 0 : index
    %4 = vector.load %arg3[%c0_4, %c0_5] : memref<1x512xf32, #tpu.memory_space<vmem>>, vector<1x512xf32>
    %5 = arith.addf %3, %4 : vector<1x512xf32>
    %cst_6 = arith.constant 0.000000e+00 : f32
    %6 = vector.broadcast %cst_6 : f32 to vector<1x512xf32>
    %7 = arith.maximumf %5, %6 : vector<1x512xf32>
    %8 = arith.truncf %7 : vector<1x512xf32> to vector<1x512xbf16>
    %c0_7 = arith.constant 0 : index
    %c0_8 = arith.constant 0 : index
    %9 = vector.load %arg4[%c0_7, %c0_8] : memref<512x256xbf16, #tpu.memory_space<vmem>>, vector<512x256xbf16>
    %cst_9 = arith.constant dense<0.000000e+00> : vector<1x256xf32>
    %10 = tpu.matmul %8, %9, %cst_9 {dimension_numbers = #tpu.dot_dimension_numbers<[1], [0], [0], [1], [0, 0, 1, 1], [], []>} : vector<1x512xbf16>, vector<512x256xbf16>, vector<1x256xf32> -> vector<1x256xf32>
    %c0_10 = arith.constant 0 : index
    %c0_11 = arith.constant 0 : index
    %11 = vector.load %arg5[%c0_10, %c0_11] : memref<1x256xf32, #tpu.memory_space<vmem>>, vector<1x256xf32>
    %12 = arith.addf %10, %11 : vector<1x256xf32>
    %cst_12 = arith.constant 0.000000e+00 : f32
    %13 = vector.broadcast %cst_12 : f32 to vector<1x256xf32>
    %14 = arith.maximumf %12, %13 : vector<1x256xf32>
    %15 = arith.truncf %14 : vector<1x256xf32> to vector<1x256xbf16>
    %c0_13 = arith.constant 0 : index
    %c0_14 = arith.constant 0 : index
    %16 = vector.load %arg6[%c0_13, %c0_14] : memref<256x128xbf16, #tpu.memory_space<vmem>>, vector<256x128xbf16>
    %cst_15 = arith.constant dense<0.000000e+00> : vector<1x128xf32>
    %17 = tpu.matmul %15, %16, %cst_15 {dimension_numbers = #tpu.dot_dimension_numbers<[1], [0], [0], [1], [0, 0, 1, 1], [], []>} : vector<1x256xbf16>, vector<256x128xbf16>, vector<1x128xf32> -> vector<1x128xf32>
    %c0_16 = arith.constant 0 : index
    %c0_17 = arith.constant 0 : index
    %18 = vector.load %arg7[%c0_16, %c0_17] : memref<1x128xf32, #tpu.memory_space<vmem>>, vector<1x128xf32>
    %19 = arith.addf %17, %18 : vector<1x128xf32>
    %cst_18 = arith.constant 0.000000e+00 : f32
    %20 = vector.broadcast %cst_18 : f32 to vector<1x128xf32>
    %21 = arith.maximumf %19, %20 : vector<1x128xf32>
    %c0_19 = arith.constant 0 : index
    %c0_20 = arith.constant 0 : index
    %c0_21 = arith.constant 0 : index
    %22 = vector.load %arg8[%c0_19, %c0_20, %c0_21] : memref<1x1x512xf32, #tpu.memory_space<vmem>>, vector<1x1x512xf32>
    %23 = vector.shape_cast %22 : vector<1x1x512xf32> to vector<1x512xf32>
    %24 = vector.shape_cast %7 : vector<1x512xf32> to vector<1x1x512xf32>
    tpu.vector_store %arg8[%c0_19, %c0_20, %c0_21], %24 {strides = array<i32>} : memref<1x1x512xf32, #tpu.memory_space<vmem>>, vector<1x1x512xf32>,
    %c0_22 = arith.constant 0 : index
    %c0_23 = arith.constant 0 : index
    %c0_24 = arith.constant 0 : index
    %25 = vector.load %arg9[%c0_22, %c0_23, %c0_24] : memref<1x1x256xf32, #tpu.memory_space<vmem>>, vector<1x1x256xf32>
    %26 = vector.shape_cast %25 : vector<1x1x256xf32> to vector<1x256xf32>
    %27 = vector.shape_cast %14 : vector<1x256xf32> to vector<1x1x256xf32>
    tpu.vector_store %arg9[%c0_22, %c0_23, %c0_24], %27 {strides = array<i32>} : memref<1x1x256xf32, #tpu.memory_space<vmem>>, vector<1x1x256xf32>,
    %c0_25 = arith.constant 0 : index
    %c0_26 = arith.constant 0 : index
    %c0_27 = arith.constant 0 : index
    %28 = vector.load %arg10[%c0_25, %c0_26, %c0_27] : memref<1x1x128xf32, #tpu.memory_space<vmem>>, vector<1x1x128xf32>
    %29 = vector.shape_cast %28 : vector<1x1x128xf32> to vector<1x128xf32>
    %30 = vector.shape_cast %21 : vector<1x128xf32> to vector<1x1x128xf32>
    tpu.vector_store %arg10[%c0_25, %c0_26, %c0_27], %30 {strides = array<i32>} : memref<1x1x128xf32, #tpu.memory_space<vmem>>, vector<1x1x128xf32>,
    return
  }
  func.func @transform_0(%arg0: i32) -> (i32, i32, i32) {
    %c0_i32 = arith.constant 0 : i32
    %c0_i32_0 = arith.constant 0 : i32
    %c0_i32_1 = arith.constant 0 : i32
    return %arg0, %c0_i32, %c0_i32_0 : i32, i32, i32
  }
  func.func @transform_1(%arg0: i32) -> (i32, i32) {
    %c0_i32 = arith.constant 0 : i32
    %c0_i32_0 = arith.constant 0 : i32
    %c0_i32_1 = arith.constant 0 : i32
    return %c0_i32, %c0_i32_0 : i32, i32
  }
  func.func @transform_2(%arg0: i32) -> (i32, i32) {
    %c0_i32 = arith.constant 0 : i32
    %c0_i32_0 = arith.constant 0 : i32
    %c0_i32_1 = arith.constant 0 : i32
    return %c0_i32, %c0_i32_0 : i32, i32
  }
  func.func @transform_3(%arg0: i32) -> (i32, i32) {
    %c0_i32 = arith.constant 0 : i32
    %c0_i32_0 = arith.constant 0 : i32
    %c0_i32_1 = arith.constant 0 : i32
    return %c0_i32, %c0_i32_0 : i32, i32
  }
  func.func @transform_4(%arg0: i32) -> (i32, i32) {
    %c0_i32 = arith.constant 0 : i32
    %c0_i32_0 = arith.constant 0 : i32
    %c0_i32_1 = arith.constant 0 : i32
    return %c0_i32, %c0_i32_0 : i32, i32
  }
  func.func @transform_5(%arg0: i32) -> (i32, i32) {
    %c0_i32 = arith.constant 0 : i32
    %c0_i32_0 = arith.constant 0 : i32
    %c0_i32_1 = arith.constant 0 : i32
    return %c0_i32, %c0_i32_0 : i32, i32
  }
  func.func @transform_6(%arg0: i32) -> (i32, i32) {
    %c0_i32 = arith.constant 0 : i32
    %c0_i32_0 = arith.constant 0 : i32
    %c0_i32_1 = arith.constant 0 : i32
    return %c0_i32, %c0_i32_0 : i32, i32
  }
  func.func @transform_7(%arg0: i32) -> (i32, i32, i32) {
    %c0_i32 = arith.constant 0 : i32
    %c0_i32_0 = arith.constant 0 : i32
    %c0_i32_1 = arith.constant 0 : i32
    return %arg0, %c0_i32, %c0_i32_0 : i32, i32, i32
  }
  func.func @transform_8(%arg0: i32) -> (i32, i32, i32) {
    %c0_i32 = arith.constant 0 : i32
    %c0_i32_0 = arith.constant 0 : i32
    %c0_i32_1 = arith.constant 0 : i32
    return %arg0, %c0_i32, %c0_i32_0 : i32, i32, i32
  }
  func.func @transform_9(%arg0: i32) -> (i32, i32, i32) {
    %c0_i32 = arith.constant 0 : i32
    %c0_i32_0 = arith.constant 0 : i32
    %c0_i32_1 = arith.constant 0 : i32
    return %arg0, %c0_i32, %c0_i32_0 : i32, i32, i32
  }
}

</mosaic_0001>

<bundles_post_ra>
// kernel: _lambda_.1
= control target key start
LH: loop header
LB: loop body
LE: loop exit
PB: predicated region body
PF: predicated region fallthrough
CT: control target
= control target key end

     0   :  { %15 = vsyncpa [#allocation3], 0  ;;  %s5269_s0 = inlined_call_operand.vmem [shape: bf16[2,1,1024], index: 0, kind: input, shape index: {}]   ;;  %s5270_s1 = inlined_call_operand.hbm [shape: bf16[1024,512], index: 1, kind: input, shape index: {}]   ;;  %s5271_s2 = inlined_call_operand.vmem [shape: f32[1,512], index: 2, kind: input, shape index: {}]   ;;  %s5272_s3 = inlined_call_operand.hbm [shape: bf16[512,256], index: 3, kind: input, shape index: {}]   ;;  %s5273_s4 = inlined_call_operand.vmem [shape: f32[1,256], index: 4, kind: input, shape index: {}]   ;;  %s5274_s5 = inlined_call_operand.vmem [shape: bf16[256,128], index: 5, kind: input, shape index: {}]   ;;  %s5275_s6 = inlined_call_operand.vmem [shape: f32[1,128], index: 6, kind: input, shape index: {}]   ;;  %s5276_s7 = inlined_call_operand.vmem [shape: f32[2,1,512], index: 7, kind: output, shape index: {0}]   ;;  %s5277_s8 = inlined_call_operand.vmem [shape: f32[2,1,256], index: 8, kind: output, shape index: {1}]   ;;  %s5278_s9 = inlined_call_operand.vmem [shape: f32[2,1,128], index: 9, kind: output, shape index: {2}]  }
   0x1   :  { %16 = vsyncpa [#allocation5], 0  ;;  %s5051_s30 = smov 0  }
   0x2 LB: > { %s268_s12 = sshll.u32 %s5270_s1, 4  ;;  %s5060_s13 = sadd.s32 4294967295, %s4993_s30   ;;  %s4993_s30 = sphi %s5051_s30, %s22_s30   ;;  %s269_s12 = int_to_ptr.hbm [resolvable:$true] %s268_s12 }
   0x3   : > { %p3185_p0 = scmp.ge.s32.totalorder %s4993_s30, 1  ;;  %p257_p1 = scmp.lt.s32.totalorder %s4993_s30, 3 }
   0x4   : > { %p4892_p2 = scmp.eq.s32.totalorder %s5060_s13, 0  ;;  %s4995_s15 = smov [#allocation2]  }
   0x5   : > { %p5065_p3 = pnand %p3185_p0, %p257_p1  ;;  %s270_s16 = sshll.u32 %s4995_s15, 4  ;;  %s271_s16 = int_to_ptr.vmem [resolvable:$true] %s270_s16 }
   0x6   : > { %s285_s19 = sshll.u32 %s5272_s3, 4  ;;  %s4996_s20 = smov [#allocation4]   ;;  %s286_s19 = int_to_ptr.hbm [resolvable:$true] %s285_s19 }
   0x7   : > { %p4885_p4 = pneg %p5065_p3  ;;  %s287_s21 = sshll.u32 %s4996_s20, 4  ;;  %s288_s21 = int_to_ptr.vmem [resolvable:$true] %s287_s21 }
   0x8   : > { %s4997_s22 = smov 256   ;;  %s4998_s23 = smov 16  }
   0x9   : > { %p4886_p5 = pnand %p4892_p2, %p4885_p4  ;;  %s4999_s24 = smov 128  }
   0xa   : > { %s5000_s25 = smov 8   ;;  %319 = sbr.rel (%p5065_p3) target bundleno = 707 (0x2c3), region = 48 }
   0xb   : > { %4888 = dma.hbm_to_vmem [thread:$0]  (!%p4886_p5), %s269_s12, 32768, %s271_s16, [#allocation3], %s4997_s22, %s4997_s22, %s4998_s23  }
   0xc   : > { %4891 = dma.hbm_to_vmem [thread:$0]  (!%p4886_p5), %s286_s19, 8192, %s288_s21, [#allocation5], %s4999_s24, %s4999_s24, %s5000_s25  }
   0xf   : > { %4984 = dma.done.wait (%p4892_p2), [#allocation3], 32768  }
  0x10   : > { %4986 = vsyncadd (%p4892_p2), [#allocation3], 4294934528 }
  0x11   : > { %4988 = dma.done.wait (%p4892_p2), [#allocation5], 8192  }
  0x12   : > { %4990 = vsyncadd (%p4892_p2), [#allocation5], 4294959104  ;;  %v3309_v0 = vld [vmem:[#allocation2 + $0xe0] sm:$0xf]  ;;  %v4571_v1 = vld [vmem:[#allocation2 + $0xec] sm:$0xf0] }
  0x13   : > { %v3437_v2 = vld [vmem:[#allocation2 + $0x1e0] sm:$0xf]  ;;  %v3310_v3 = vor.u32 %v4571_v1, %v3309_v0  ;;  %v4603_v4 = vld [vmem:[#allocation2 + $0x1ec] sm:$0xf0]  ;;  %p366_p6 = scmp.lt.s32.totalorder %s5060_s13, 1  ;;  %vm3031_vm0 = vcmask 1040384  }
  0x14   : > { %v3565_v5 = vld [vmem:[#allocation2 + $0x2e0] sm:$0xf]  ;;  %v4635_v6 = vld [vmem:[#allocation2 + $0x2ec] sm:$0xf0]  ;;  %v3438_v7 = vor.u32 %v4603_v4, %v3437_v2  ;;  %vm3033_vm1 = vcmask 1042434   ;;  %vm3035_vm2 = vcmask 1041408  }
  0x15   : > { %v3566_v8 = vor.u32 %v4635_v6, %v3565_v5  ;;  %v3693_v9 = vld [vmem:[#allocation2 + $0x3e0] sm:$0xf]  ;;  %v4667_v10 = vld [vmem:[#allocation2 + $0x3ec] sm:$0xf0]  ;;  %1946 = vmatpush.bf16.msra.mxu0 %v3310_v3  ;;  %s5281_s13 = smov (!%p366_p6, %s5060_s13), 1 }
  0x16   : > { %v3293_v11 = vld [vmem:[#allocation2 + $0xc0] sm:$0xf]  ;;  %v3694_v12 = vor.u32 %v4667_v10, %v3693_v9  ;;  %v4567_v13 = vld [vmem:[#allocation2 + $0xcc] sm:$0xf0]  ;;  %1959 = vmatpush.bf16.msra.mxu1 %v3438_v7  ;;  %s3192_s26 = sshll.u32 %s5281_s13, 3  ;;  %s3193_s15 = sshll.u32 %s5281_s13, 2 }
  0x17   : > { %v3421_v14 = vld [vmem:[#allocation2 + $0x1c0] sm:$0xf]  ;;  %v4599_v15 = vld [vmem:[#allocation2 + $0x1cc] sm:$0xf0]  ;;  %1972 = vmatpush.bf16.msra.mxu2 %v3566_v8  ;;  %v3294_v16 = vor.u32 %v4567_v13, %v3293_v11  ;;  %s369_s29 = scalar_lea.vmem %s5269_s0, %s3192_s26  ;;  %s373_s18 = scalar_lea.vmem %s5276_s7, %s3193_s15 }
  0x18   : > { %v3422_v17 = vor.u32 %v4599_v15, %v3421_v14  ;;  %v3549_v18 = vld [vmem:[#allocation2 + $0x2c0] sm:$0xf]  ;;  %v4631_v19 = vld [vmem:[#allocation2 + $0x2cc] sm:$0xf0]  ;;  %1985 = vmatpush.bf16.msra.mxu3 %v3694_v12  ;;  %s3194_s15 = sshll.u32 %s5281_s13, 1  ;;  %s380_s23 = scalar_lea.vmem %s5278_s9, %s5281_s13 }
  0x19   : > { %v3677_v20 = vld [vmem:[#allocation2 + $0x3c0] sm:$0xf]  ;;  %v3550_v21 = vor.u32 %v4631_v19, %v3549_v18  ;;  %v4663_v22 = vld [vmem:[#allocation2 + $0x3cc] sm:$0xf0]  ;;  %1947 = vmatpush.bf16.msra.mxu0 %v3294_v16 }
  0x1a   : > { %v3277_v23 = vld [vmem:[#allocation2 + $0xa0] sm:$0xf]  ;;  %v4563_v24 = vld [vmem:[#allocation2 + $0xac] sm:$0xf0]  ;;  %v3678_v25 = vor.u32 %v4663_v22, %v3677_v20  ;;  %1960 = vmatpush.bf16.msra.mxu1 %v3422_v17 }
  0x1b   : > { %v3405_v26 = vld [vmem:[#allocation2 + $0x1a0] sm:$0xf]  ;;  %v4595_v27 = vld [vmem:[#allocation2 + $0x1ac] sm:$0xf0]  ;;  %v3278_v29 = vor.u32 %v4563_v24, %v3277_v23  ;;  %1973 = vmatpush.bf16.msra.mxu2 %v3550_v21 }
  0x1c   : > { %v3533_v28 = vld [vmem:[#allocation2 + $0x2a0] sm:$0xf]  ;;  %v4627_v30 = vld [vmem:[#allocation2 + $0x2ac] sm:$0xf0]  ;;  %v3406_v33 = vor.u32 %v4595_v27, %v3405_v26  ;;  %1986 = vmatpush.bf16.msra.mxu3 %v3678_v25 }
  0x1d   : > { %v3661_v31 = vld [vmem:[#allocation2 + $0x3a0] sm:$0xf]  ;;  %v4659_v32 = vld [vmem:[#allocation2 + $0x3ac] sm:$0xf0]  ;;  %v3534_v34 = vor.u32 %v4627_v30, %v3533_v28  ;;  %1948 = vmatpush.bf16.msra.mxu0 %v3278_v29 }
  0x1e   : > { %v3261_v35 = vld [vmem:[#allocation2 + $0x80] sm:$0xf]  ;;  %v4559_v36 = vld [vmem:[#allocation2 + $0x8c] sm:$0xf0]  ;;  %v3662_v38 = vor.u32 %v4659_v32, %v3661_v31  ;;  %1961 = vmatpush.bf16.msra.mxu1 %v3406_v33 }
  0x1f   : > { %v3389_v37 = vld [vmem:[#allocation2 + $0x180] sm:$0xf]  ;;  %v4591_v39 = vld [vmem:[#allocation2 + $0x18c] sm:$0xf0]  ;;  %v3262_v44 = vor.u32 %v4559_v36, %v3261_v35  ;;  %1974 = vmatpush.bf16.msra.mxu2 %v3534_v34 }
  0x20   : > { %v3517_v40 = vld [vmem:[#allocation2 + $0x280] sm:$0xf]  ;;  %v4623_v41 = vld [vmem:[#allocation2 + $0x28c] sm:$0xf0]  ;;  %v3390_v45 = vor.u32 %v4591_v39, %v3389_v37  ;;  %1987 = vmatpush.bf16.msra.mxu3 %v3662_v38 }
  0x21   : > { %v3645_v42 = vld [vmem:[#allocation2 + $0x380] sm:$0xf]  ;;  %v4655_v43 = vld [vmem:[#allocation2 + $0x38c] sm:$0xf0]  ;;  %v3518_v46 = vor.u32 %v4623_v41, %v3517_v40  ;;  %1949 = vmatpush.bf16.msra.mxu0 %v3262_v44 }
  0x22   : > { %v3245_v47 = vld [vmem:[#allocation2 + $0x60] sm:$0xf]  ;;  %v4555_v48 = vld [vmem:[#allocation2 + $0x6c] sm:$0xf0]  ;;  %v3646_v50 = vor.u32 %v4655_v43, %v3645_v42  ;;  %1962 = vmatpush.bf16.msra.mxu1 %v3390_v45 }
  0x23   : > { %v3373_v49 = vld [vmem:[#allocation2 + $0x160] sm:$0xf]  ;;  %v4587_v51 = vld [vmem:[#allocation2 + $0x16c] sm:$0xf0]  ;;  %v3246_v56 = vor.u32 %v4555_v48, %v3245_v47  ;;  %1975 = vmatpush.bf16.msra.mxu2 %v3518_v46 }
  0x24   : > { %v3501_v52 = vld [vmem:[#allocation2 + $0x260] sm:$0xf]  ;;  %v4619_v53 = vld [vmem:[#allocation2 + $0x26c] sm:$0xf0]  ;;  %v3374_v57 = vor.u32 %v4587_v51, %v3373_v49  ;;  %1988 = vmatpush.bf16.msra.mxu3 %v3646_v50 }
  0x25   : > { %v3629_v54 = vld [vmem:[#allocation2 + $0x360] sm:$0xf]  ;;  %v4651_v55 = vld [vmem:[#allocation2 + $0x36c] sm:$0xf0]  ;;  %v3502_v58 = vor.u32 %v4619_v53, %v3501_v52  ;;  %1950 = vmatpush.bf16.msra.mxu0 %v3246_v56 }
  0x26   : > { %v3229_v59 = vld [vmem:[#allocation2 + $0x40] sm:$0xf]  ;;  %v4551_v60 = vld [vmem:[#allocation2 + $0x4c] sm:$0xf0]  ;;  %v3630_v62 = vor.u32 %v4651_v55, %v3629_v54  ;;  %1963 = vmatpush.bf16.msra.mxu1 %v3374_v57 }
  0x27   : > { %v3357_v61 = vld [vmem:[#allocation2 + $0x140] sm:$0xf]  ;;  %v4583_v63 = vld [vmem:[#allocation2 + $0x14c] sm:$0xf0]  ;;  %v3230_v4 = vor.u32 %v4551_v60, %v3229_v59  ;;  %1976 = vmatpush.bf16.msra.mxu2 %v3502_v58 }
  0x28   : > { %v3485_v0 = vld [vmem:[#allocation2 + $0x240] sm:$0xf]  ;;  %v4615_v1 = vld [vmem:[#allocation2 + $0x24c] sm:$0xf0]  ;;  %v3358_v5 = vor.u32 %v4583_v63, %v3357_v61  ;;  %1989 = vmatpush.bf16.msra.mxu3 %v3630_v62 }
  0x29   : > { %v3613_v2 = vld [vmem:[#allocation2 + $0x340] sm:$0xf]  ;;  %v4647_v3 = vld [vmem:[#allocation2 + $0x34c] sm:$0xf0]  ;;  %v3486_v6 = vor.u32 %v4615_v1, %v3485_v0  ;;  %1951 = vmatpush.bf16.msra.mxu0 %v3230_v4 }
  0x2a   : > { %v3213_v7 = vld [vmem:[#allocation2 + $0x20] sm:$0xf]  ;;  %v4547_v8 = vld [vmem:[#allocation2 + $0x2c] sm:$0xf0]  ;;  %v3614_v10 = vor.u32 %v4647_v3, %v3613_v2  ;;  %1964 = vmatpush.bf16.msra.mxu1 %v3358_v5  ;;  %v381_v2 = vld [vmem:[%s369_s29] sm:$0xff] }
  0x2b   : > { %v3341_v9 = vld [vmem:[#allocation2 + $0x120] sm:$0xf]  ;;  %v4579_v11 = vld [vmem:[#allocation2 + $0x12c] sm:$0xf0]  ;;  %v3214_v16 = vor.u32 %v4547_v8, %v3213_v7  ;;  %1977 = vmatpush.bf16.msra.mxu2 %v3486_v6  ;;  %640 = vst [vmem:[#allocation1] ss:$9 sm:$0xff] %v381_v2 }
  0x2c   : > { %v3469_v12 = vld [vmem:[#allocation2 + $0x220] sm:$0xf]  ;;  %v4611_v13 = vld [vmem:[#allocation2 + $0x22c] sm:$0xf0]  ;;  %v3342_v19 = vor.u32 %v4579_v11, %v3341_v9  ;;  %1990 = vmatpush.bf16.msra.mxu3 %v3614_v10  ;;  %v3311_v2 = vld [vmem:[#allocation2 + $0xf0] sm:$0xf0] }
  0x2d   : > { %v3597_v14 = vld [vmem:[#allocation2 + $0x320] sm:$0xf]  ;;  %v4643_v15 = vld [vmem:[#allocation2 + $0x32c] sm:$0xf0]  ;;  %v3470_v20 = vor.u32 %v4611_v13, %v3469_v12  ;;  %1952 = vmatpush.bf16.msra.mxu0 %v3214_v16 }
  0x2e   : > { %v3197_v17 = vld [vmem:[#allocation2] sm:$0xf]  ;;  %v4543_v18 = vld [vmem:[#allocation2 + $0xc] sm:$0xf0]  ;;  %v3598_v24 = vor.u32 %v4643_v15, %v3597_v14  ;;  %1965 = vmatpush.bf16.msra.mxu1 %v3342_v19 }
  0x2f   : > { %v3325_v21 = vld [vmem:[#allocation2 + $0x100] sm:$0xf]  ;;  %v4575_v22 = vld [vmem:[#allocation2 + $0x10c] sm:$0xf0]  ;;  %v3198_v31 = vor.u32 %v4543_v18, %v3197_v17  ;;  %1978 = vmatpush.bf16.msra.mxu2 %v3470_v20 }
  0x30   : > { %v3453_v23 = vld [vmem:[#allocation2 + $0x200] sm:$0xf]  ;;  %v4607_v25 = vld [vmem:[#allocation2 + $0x20c] sm:$0xf0]  ;;  %v3326_v35 = vor.u32 %v4575_v22, %v3325_v21  ;;  %1991 = vmatpush.bf16.msra.mxu3 %v3598_v24 }
  0x31   : > { %v3581_v26 = vld [vmem:[#allocation2 + $0x300] sm:$0xf]  ;;  %v4639_v27 = vld [vmem:[#allocation2 + $0x30c] sm:$0xf0]  ;;  %v3454_v36 = vor.u32 %v4607_v25, %v3453_v23  ;;  %1953 = vmatpush.bf16.msra.mxu0 %v3198_v31 }
  0x32   : > { %v3821_v28 = vld [vmem:[#allocation2 + $0x4e0] sm:$0xf]  ;;  %v4699_v29 = vld [vmem:[#allocation2 + $0x4ec] sm:$0xf0]  ;;  %v3582_v39 = vor.u32 %v4639_v27, %v3581_v26  ;;  %1966 = vmatpush.bf16.msra.mxu1 %v3326_v35 }
  0x33   : > { %v3949_v30 = vld [vmem:[#allocation2 + $0x5e0] sm:$0xf]  ;;  %v4731_v32 = vld [vmem:[#allocation2 + $0x5ec] sm:$0xf0]  ;;  %v3822_v40 = vor.u32 %v4699_v29, %v3821_v28  ;;  %1979 = vmatpush.bf16.msra.mxu2 %v3454_v36  ;;  %v5098_v28 = vld [vmem:[#allocation1] sm:$0xff] }
  0x34   : > { %v4077_v33 = vld [vmem:[#allocation2 + $0x6e0] sm:$0xf]  ;;  %v4763_v34 = vld [vmem:[#allocation2 + $0x6ec] sm:$0xf0]  ;;  %v3950_v41 = vor.u32 %v4731_v32, %v3949_v30  ;;  %1992 = vmatpush.bf16.msra.mxu3 %v3582_v39  ;;  %1954 = vmatmul.bf16.vlgmr.msra.gmra.mxu0 %v5098_v28 }
  0x35   : > { %v4205_v37 = vld [vmem:[#allocation2 + $0x7e0] sm:$0xf]  ;;  %v4795_v38 = vld [vmem:[#allocation2 + $0x7ec] sm:$0xf0]  ;;  %v4078_v42 = vor.u32 %v4763_v34, %v4077_v33  ;;  %1998 = vmatpush.bf16.msrb.mxu0 %v3822_v40 }
  0x36   : > { %v3805_v43 = vld [vmem:[#allocation2 + $0x4c0] sm:$0xf]  ;;  %v4695_v44 = vld [vmem:[#allocation2 + $0x4cc] sm:$0xf0]  ;;  %v4206_v46 = vor.u32 %v4795_v38, %v4205_v37  ;;  %2011 = vmatpush.bf16.msrb.mxu1 %v3950_v41 }
  0x37   : > { %v3933_v45 = vld [vmem:[#allocation2 + $0x5c0] sm:$0xf]  ;;  %v4727_v47 = vld [vmem:[#allocation2 + $0x5cc] sm:$0xf0]  ;;  %v3806_v52 = vor.u32 %v4695_v44, %v3805_v43  ;;  %2024 = vmatpush.bf16.msrb.mxu2 %v4078_v42 }
  0x38   : > { %v4061_v48 = vld [vmem:[#allocation2 + $0x6c0] sm:$0xf]  ;;  %v4759_v49 = vld [vmem:[#allocation2 + $0x6cc] sm:$0xf0]  ;;  %v3934_v53 = vor.u32 %v4727_v47, %v3933_v45  ;;  %2037 = vmatpush.bf16.msrb.mxu3 %v4206_v46 }
  0x39   : > { %v4189_v50 = vld [vmem:[#allocation2 + $0x7c0] sm:$0xf]  ;;  %v4791_v51 = vld [vmem:[#allocation2 + $0x7cc] sm:$0xf0]  ;;  %v4062_v54 = vor.u32 %v4759_v49, %v4061_v48  ;;  %1999 = vmatpush.bf16.msrb.mxu0 %v3806_v52 }
  0x3a   : > { %v3789_v55 = vld [vmem:[#allocation2 + $0x4a0] sm:$0xf]  ;;  %v4691_v56 = vld [vmem:[#allocation2 + $0x4ac] sm:$0xf0]  ;;  %v4190_v58 = vor.u32 %v4791_v51, %v4189_v50  ;;  %2012 = vmatpush.bf16.msrb.mxu1 %v3934_v53 }
  0x3b   : > { %v3917_v57 = vld [vmem:[#allocation2 + $0x5a0] sm:$0xf]  ;;  %v4723_v59 = vld [vmem:[#allocation2 + $0x5ac] sm:$0xf0]  ;;  %v3790_v0 = vor.u32 %v4691_v56, %v3789_v55  ;;  %2025 = vmatpush.bf16.msrb.mxu2 %v4062_v54 }
  0x3c   : > { %v4045_v60 = vld [vmem:[#allocation2 + $0x6a0] sm:$0xf]  ;;  %v4755_v61 = vld [vmem:[#allocation2 + $0x6ac] sm:$0xf0]  ;;  %v3918_v3 = vor.u32 %v4723_v59, %v3917_v57  ;;  %2038 = vmatpush.bf16.msrb.mxu3 %v4190_v58 }
  0x3d   : > { %v4173_v62 = vld [vmem:[#allocation2 + $0x7a0] sm:$0xf]  ;;  %v4787_v63 = vld [vmem:[#allocation2 + $0x7ac] sm:$0xf0]  ;;  %v4046_v4 = vor.u32 %v4755_v61, %v4045_v60  ;;  %2000 = vmatpush.bf16.msrb.mxu0 %v3790_v0 }
  0x3e   : > { %v3773_v1 = vld [vmem:[#allocation2 + $0x480] sm:$0xf]  ;;  %v4687_v5 = vld [vmem:[#allocation2 + $0x48c] sm:$0xf0]  ;;  %v4174_v7 = vor.u32 %v4787_v63, %v4173_v62  ;;  %2013 = vmatpush.bf16.msrb.mxu1 %v3918_v3  ;;  %v4601_v3 = vld [vmem:[#allocation2 + $0x1e4] sm:$0xf] }
  0x3f   : > { %v3901_v6 = vld [vmem:[#allocation2 + $0x580] sm:$0xf]  ;;  %v4719_v8 = vld [vmem:[#allocation2 + $0x58c] sm:$0xf0]  ;;  %v3774_v13 = vor.u32 %v4687_v5, %v3773_v1  ;;  %2026 = vmatpush.bf16.msrb.mxu2 %v4046_v4  ;;  %v4569_v1 = vld [vmem:[#allocation2 + $0xe4] sm:$0xf] }
  0x40   : > { %v4029_v9 = vld [vmem:[#allocation2 + $0x680] sm:$0xf]  ;;  %v4751_v10 = vld [vmem:[#allocation2 + $0x68c] sm:$0xf0]  ;;  %v3902_v14 = vor.u32 %v4719_v8, %v3901_v6  ;;  %2039 = vmatpush.bf16.msrb.mxu3 %v4174_v7  ;;  %v3439_v5 = vld [vmem:[#allocation2 + $0x1f0] sm:$0xf0] }
  0x41   : > { %v4157_v11 = vld [vmem:[#allocation2 + $0x780] sm:$0xf]  ;;  %v4783_v12 = vld [vmem:[#allocation2 + $0x78c] sm:$0xf0]  ;;  %v4030_v15 = vor.u32 %v4751_v10, %v4029_v9  ;;  %2001 = vmatpush.bf16.msrb.mxu0 %v3774_v13  ;;  %v4633_v6 = vld [vmem:[#allocation2 + $0x2e4] sm:$0xf]  ;;  %v3314_v13 = vor.u32 %v4569_v1, %v3311_v2 }
  0x42   : > { %v3757_v16 = vld [vmem:[#allocation2 + $0x460] sm:$0xf]  ;;  %v4683_v17 = vld [vmem:[#allocation2 + $0x46c] sm:$0xf0]  ;;  %v4158_v19 = vor.u32 %v4783_v12, %v4157_v11  ;;  %2014 = vmatpush.bf16.msrb.mxu1 %v3902_v14  ;;  %v3567_v7 = vld [vmem:[#allocation2 + $0x2f0] sm:$0xf0]  ;;  %v3442_v14 = vor.u32 %v4601_v3, %v3439_v5 }
  0x43   : > { %v3885_v18 = vld [vmem:[#allocation2 + $0x560] sm:$0xf]  ;;  %v4715_v20 = vld [vmem:[#allocation2 + $0x56c] sm:$0xf0]  ;;  %v3758_v26 = vor.u32 %v4683_v17, %v3757_v16  ;;  %2027 = vmatpush.bf16.msrb.mxu2 %v4030_v15  ;;  %v4665_v10 = vld [vmem:[#allocation2 + $0x3e4] sm:$0xf]  ;;  %v3570_v15 = vor.u32 %v4633_v6, %v3567_v7 }
  0x44   : > { %v4013_v21 = vld [vmem:[#allocation2 + $0x660] sm:$0xf]  ;;  %v4747_v22 = vld [vmem:[#allocation2 + $0x66c] sm:$0xf0]  ;;  %v3886_v30 = vor.u32 %v4715_v20, %v3885_v18  ;;  %2040 = vmatpush.bf16.msrb.mxu3 %v4158_v19  ;;  %v3695_v11 = vld [vmem:[#allocation2 + $0x3f0] sm:$0xf0] }
  0x45   : > { %v4141_v23 = vld [vmem:[#allocation2 + $0x760] sm:$0xf]  ;;  %v4779_v24 = vld [vmem:[#allocation2 + $0x76c] sm:$0xf0]  ;;  %v4014_v31 = vor.u32 %v4747_v22, %v4013_v21  ;;  %2002 = vmatpush.bf16.msrb.mxu0 %v3758_v26  ;;  %v4565_v16 = vld [vmem:[#allocation2 + $0xc4] sm:$0xf]  ;;  %v3698_v19 = vor.u32 %v4665_v10, %v3695_v11 }
  0x46   : > { %v3741_v25 = vld [vmem:[#allocation2 + $0x440] sm:$0xf]  ;;  %v5096_v27 = vld [vmem:[#allocation1 + $0x12] sm:$0xff]  ;;  %v5100_v29 = vld [vmem:[#allocation1 + $0x1b] sm:$0xff]  ;;  %v4142_v35 = vor.u32 %v4779_v24, %v4141_v23  ;;  %2015 = vmatpush.bf16.msrb.mxu1 %v3886_v30 }
  0x47   : > { %v4679_v32 = vld [vmem:[#allocation2 + $0x44c] sm:$0xf0]  ;;  %v3869_v33 = vld [vmem:[#allocation2 + $0x540] sm:$0xf]  ;;  %1980 = vmatmul.bf16.vlgmr.msra.gmra.mxu2 %v5096_v27  ;;  %1993 = vmatmul.bf16.vlgmr.msra.gmra.mxu3 %v5100_v29  ;;  %v3295_v17 = vld [vmem:[#allocation2 + $0xd0] sm:$0xf0] }
  0x48   : > { %v5102_v34 = vld [vmem:[#allocation1 + $0x9] sm:$0xff]  ;;  %v4711_v36 = vld [vmem:[#allocation2 + $0x54c] sm:$0xf0]  ;;  %v3742_v41 = vor.u32 %v4679_v32, %v3741_v25  ;;  %2028 = vmatpush.bf16.msrb.mxu2 %v4014_v31  ;;  %2041 = vmatpush.bf16.msrb.mxu3 %v4142_v35  ;;  %v3423_v20 = vld [vmem:[#allocation2 + $0x1d0] sm:$0xf0]  ;;  %v3298_v26 = vor.u32 %v4565_v16, %v3295_v17 }
  0x49   : > { %v3997_v37 = vld [vmem:[#allocation2 + $0x640] sm:$0xf]  ;;  %v4743_v38 = vld [vmem:[#allocation2 + $0x64c] sm:$0xf0]  ;;  %1967 = vmatmul.bf16.vlgmr.msra.gmra.mxu1 %v5102_v34  ;;  %v3870_v42 = vor.u32 %v4711_v36, %v3869_v33  ;;  %v4597_v18 = vld [vmem:[#allocation2 + $0x1c4] sm:$0xf] }
  0x4a   : > { %v4125_v39 = vld [vmem:[#allocation2 + $0x740] sm:$0xf]  ;;  %v4775_v40 = vld [vmem:[#allocation2 + $0x74c] sm:$0xf0]  ;;  %v3998_v43 = vor.u32 %v4743_v38, %v3997_v37  ;;  %2003 = vmatpush.bf16.msrb.mxu0 %v3742_v41  ;;  %v4629_v21 = vld [vmem:[#allocation2 + $0x2c4] sm:$0xf]  ;;  %v3426_v33 = vor.u32 %v4597_v18, %v3423_v20 }
  0x4b   : > { %v3725_v44 = vld [vmem:[#allocation2 + $0x420] sm:$0xf]  ;;  %v4675_v45 = vld [vmem:[#allocation2 + $0x42c] sm:$0xf0]  ;;  %v4126_v47 = vor.u32 %v4775_v40, %v4125_v39  ;;  %2016 = vmatpush.bf16.msrb.mxu1 %v3870_v42  ;;  %v3551_v22 = vld [vmem:[#allocation2 + $0x2d0] sm:$0xf0] }
  0x4c   : > { %v3853_v46 = vld [vmem:[#allocation2 + $0x520] sm:$0xf]  ;;  %v4707_v48 = vld [vmem:[#allocation2 + $0x52c] sm:$0xf0]  ;;  %v3726_v53 = vor.u32 %v4675_v45, %v3725_v44  ;;  %2029 = vmatpush.bf16.msrb.mxu2 %v3998_v43  ;;  %v4661_v23 = vld [vmem:[#allocation2 + $0x3c4] sm:$0xf]  ;;  %v3554_v35 = vor.u32 %v4629_v21, %v3551_v22 }
  0x4d   : > { %v3981_v49 = vld [vmem:[#allocation2 + $0x620] sm:$0xf]  ;;  %v4739_v50 = vld [vmem:[#allocation2 + $0x62c] sm:$0xf0]  ;;  %v3854_v56 = vor.u32 %v4707_v48, %v3853_v46  ;;  %2042 = vmatpush.bf16.msrb.mxu3 %v4126_v47  ;;  %v3679_v24 = vld [vmem:[#allocation2 + $0x3d0] sm:$0xf0] }
  0x4e   : > { %v4109_v51 = vld [vmem:[#allocation2 + $0x720] sm:$0xf]  ;;  %v4771_v52 = vld [vmem:[#allocation2 + $0x72c] sm:$0xf0]  ;;  %v3982_v57 = vor.u32 %v4739_v50, %v3981_v49  ;;  %2004 = vmatpush.bf16.msrb.mxu0 %v3726_v53  ;;  %v4561_v30 = vld [vmem:[#allocation2 + $0xa4] sm:$0xf]  ;;  %v3682_v39 = vor.u32 %v4661_v23, %v3679_v24 }
  0x4f   : > { %v3709_v54 = vld [vmem:[#allocation2 + $0x400] sm:$0xf]  ;;  %v4671_v55 = vld [vmem:[#allocation2 + $0x40c] sm:$0xf0]  ;;  %v4110_v61 = vor.u32 %v4771_v52, %v4109_v51  ;;  %2017 = vmatpush.bf16.msrb.mxu1 %v3854_v56  ;;  %v5112_v32 = vld [vmem:[#allocation1 + $0x3f] sm:$0xff] }
  0x50   : > { %v3837_v58 = vld [vmem:[#allocation2 + $0x500] sm:$0xf]  ;;  %v4703_v59 = vld [vmem:[#allocation2 + $0x50c] sm:$0xf0]  ;;  %v3710_v4 = vor.u32 %v4671_v55, %v3709_v54  ;;  %2030 = vmatpush.bf16.msrb.mxu2 %v3982_v57  ;;  %v3279_v36 = vld [vmem:[#allocation2 + $0xb0] sm:$0xf0] }
  0x51   : > { %v3965_v60 = vld [vmem:[#allocation2 + $0x600] sm:$0xf]  ;;  %v4735_v62 = vld [vmem:[#allocation2 + $0x60c] sm:$0xf0]  ;;  %v3838_v8 = vor.u32 %v4703_v59, %v3837_v58  ;;  %2043 = vmatpush.bf16.msrb.mxu3 %v4110_v61  ;;  %v4593_v37 = vld [vmem:[#allocation2 + $0x1a4] sm:$0xf]  ;;  %v3282_v45 = vor.u32 %v4561_v30, %v3279_v36 }
  0x52   : > { %v4093_v63 = vld [vmem:[#allocation2 + $0x700] sm:$0xf]  ;;  %v4767_v0 = vld [vmem:[#allocation2 + $0x70c] sm:$0xf0]  ;;  %v3966_v9 = vor.u32 %v4735_v62, %v3965_v60  ;;  %2005 = vmatpush.bf16.msrb.mxu0 %v3710_v4  ;;  %v5114_v38 = vld [vmem:[#allocation1 + $0x2d] sm:$0xff] }
  0x53   : > { %v4094_v12 = vor.u32 %v4767_v0, %v4093_v63  ;;  %2018 = vmatpush.bf16.msrb.mxu1 %v3838_v8  ;;  %v5108_v25 = vld [vmem:[#allocation1 + $0x36] sm:$0xff]  ;;  %v5110_v31 = vld [vmem:[#allocation1 + $0x24] sm:$0xff]  ;;  %v4625_v41 = vld [vmem:[#allocation2 + $0x2a4] sm:$0xf] }
  0x54   : > { %2031 = vmatpush.bf16.msrb.mxu2 %v3966_v9  ;;  %v3407_v40 = vld [vmem:[#allocation2 + $0x1b0] sm:$0xf0]  ;;  %v4657_v43 = vld [vmem:[#allocation2 + $0x3a4] sm:$0xf] }
  0x55   : > { %2044 = vmatpush.bf16.msrb.mxu3 %v4094_v12  ;;  %v3535_v42 = vld [vmem:[#allocation2 + $0x2b0] sm:$0xf0]  ;;  %2006 = vmatmul.bf16.vlgmr.msrb.gmra.mxu0 %v5110_v31  ;;  %v3410_v46 = vor.u32 %v4593_v37, %v3407_v40  ;;  %v4557_v48 = vld [vmem:[#allocation2 + $0x84] sm:$0xf] }
  0x56   : > { %2050 = vmatpush.bf16.msra.mxu0 %v3314_v13  ;;  %v3663_v44 = vld [vmem:[#allocation2 + $0x3b0] sm:$0xf0]  ;;  %v3538_v47 = vor.u32 %v4625_v41, %v3535_v42  ;;  %v4589_v50 = vld [vmem:[#allocation2 + $0x184] sm:$0xf] }
  0x57   : > { %2063 = vmatpush.bf16.msra.mxu1 %v3442_v14  ;;  %2032 = vmatmul.bf16.vlgmr.msrb.gmra.mxu2 %v5108_v25  ;;  %v3263_v49 = vld [vmem:[#allocation2 + $0x90] sm:$0xf0]  ;;  %v3666_v51 = vor.u32 %v4657_v43, %v3663_v44  ;;  %v4621_v53 = vld [vmem:[#allocation2 + $0x284] sm:$0xf] }
  0x58   : > { %2076 = vmatpush.bf16.msra.mxu2 %v3570_v15  ;;  %2045 = vmatmul.bf16.vlgmr.msrb.gmra.mxu3 %v5112_v32  ;;  %v3391_v52 = vld [vmem:[#allocation2 + $0x190] sm:$0xf0]  ;;  %v4653_v55 = vld [vmem:[#allocation2 + $0x384] sm:$0xf]  ;;  %v3266_v57 = vor.u32 %v4557_v48, %v3263_v49 }
  0x59   : > { %2089 = vmatpush.bf16.msra.mxu3 %v3698_v19  ;;  %2019 = vmatmul.bf16.vlgmr.msrb.gmra.mxu1 %v5114_v38  ;;  %v3519_v54 = vld [vmem:[#allocation2 + $0x290] sm:$0xf0]  ;;  %v3394_v58 = vor.u32 %v4589_v50, %v3391_v52  ;;  %v4553_v60 = vld [vmem:[#allocation2 + $0x64] sm:$0xf] }
  0x5a   : > { %2051 = vmatpush.bf16.msra.mxu0 %v3298_v26  ;;  %v3647_v56 = vld [vmem:[#allocation2 + $0x390] sm:$0xf0]  ;;  %v3522_v59 = vor.u32 %v4621_v53, %v3519_v54  ;;  %v4585_v62 = vld [vmem:[#allocation2 + $0x164] sm:$0xf] }
  0x5b   : > { %2064 = vmatpush.bf16.msra.mxu1 %v3426_v33  ;;  %v3247_v61 = vld [vmem:[#allocation2 + $0x70] sm:$0xf0]  ;;  %v3650_v63 = vor.u32 %v4653_v55, %v3647_v56  ;;  %v4617_v1 = vld [vmem:[#allocation2 + $0x264] sm:$0xf] }
  0x5c   : > { %2077 = vmatpush.bf16.msra.mxu2 %v3554_v35  ;;  %v3375_v0 = vld [vmem:[#allocation2 + $0x170] sm:$0xf0]  ;;  %v4649_v3 = vld [vmem:[#allocation2 + $0x364] sm:$0xf]  ;;  %v3250_v5 = vor.u32 %v4553_v60, %v3247_v61 }
  0x5d   : > { %2090 = vmatpush.bf16.msra.mxu3 %v3682_v39  ;;  %v3503_v2 = vld [vmem:[#allocation2 + $0x270] sm:$0xf0]  ;;  %v3378_v6 = vor.u32 %v4585_v62, %v3375_v0  ;;  %v4549_v8 = vld [vmem:[#allocation2 + $0x44] sm:$0xf] }
  0x5e   : > { %2052 = vmatpush.bf16.msra.mxu0 %v3282_v45  ;;  %v3631_v4 = vld [vmem:[#allocation2 + $0x370] sm:$0xf0]  ;;  %v3506_v7 = vor.u32 %v4617_v1, %v3503_v2  ;;  %v4581_v10 = vld [vmem:[#allocation2 + $0x144] sm:$0xf] }
  0x5f   : > { %2065 = vmatpush.bf16.msra.mxu1 %v3410_v46  ;;  %v3231_v9 = vld [vmem:[#allocation2 + $0x50] sm:$0xf0]  ;;  %v3634_v11 = vor.u32 %v4649_v3, %v3631_v4  ;;  %v4613_v13 = vld [vmem:[#allocation2 + $0x244] sm:$0xf] }
  0x60   : > { %2078 = vmatpush.bf16.msra.mxu2 %v3538_v47  ;;  %v3359_v12 = vld [vmem:[#allocation2 + $0x150] sm:$0xf0]  ;;  %v4645_v15 = vld [vmem:[#allocation2 + $0x344] sm:$0xf]  ;;  %v3234_v17 = vor.u32 %v4549_v8, %v3231_v9 }
  0x61   : > { %2091 = vmatpush.bf16.msra.mxu3 %v3666_v51  ;;  %v3487_v14 = vld [vmem:[#allocation2 + $0x250] sm:$0xf0]  ;;  %v3362_v18 = vor.u32 %v4581_v10, %v3359_v12  ;;  %v4545_v20 = vld [vmem:[#allocation2 + $0x24] sm:$0xf] }
  0x62   : > { %2053 = vmatpush.bf16.msra.mxu0 %v3266_v57  ;;  %v3615_v16 = vld [vmem:[#allocation2 + $0x350] sm:$0xf0]  ;;  %v3490_v19 = vor.u32 %v4613_v13, %v3487_v14  ;;  %v4577_v22 = vld [vmem:[#allocation2 + $0x124] sm:$0xf] }
  0x63   : > { %2066 = vmatpush.bf16.msra.mxu1 %v3394_v58  ;;  %v3215_v21 = vld [vmem:[#allocation2 + $0x30] sm:$0xf0]  ;;  %v3618_v23 = vor.u32 %v4645_v15, %v3615_v16  ;;  %v4609_v26 = vld [vmem:[#allocation2 + $0x224] sm:$0xf] }
  0x64   : > { %2079 = vmatpush.bf16.msra.mxu2 %v3522_v59  ;;  %v3343_v24 = vld [vmem:[#allocation2 + $0x130] sm:$0xf0]  ;;  %v4641_v33 = vld [vmem:[#allocation2 + $0x324] sm:$0xf]  ;;  %v3218_v36 = vor.u32 %v4545_v20, %v3215_v21 }
  0x65   : > { %2092 = vmatpush.bf16.msra.mxu3 %v3650_v63  ;;  %v3471_v30 = vld [vmem:[#allocation2 + $0x230] sm:$0xf0]  ;;  %v4541_v37 = vld [vmem:[#allocation2 + $0x4] sm:$0xf]  ;;  %v3346_v40 = vor.u32 %v4577_v22, %v3343_v24 }
  0x66   : > { %2054 = vmatpush.bf16.msra.mxu0 %v3250_v5  ;;  %v3599_v35 = vld [vmem:[#allocation2 + $0x330] sm:$0xf0]  ;;  %v3474_v41 = vor.u32 %v4609_v26, %v3471_v30  ;;  %v4573_v42 = vld [vmem:[#allocation2 + $0x104] sm:$0xf] }
  0x67   : > { %2067 = vmatpush.bf16.msra.mxu1 %v3378_v6  ;;  %v3199_v39 = vld [vmem:[#allocation2 + $0x10] sm:$0xf0]  ;;  %v4605_v44 = vld [vmem:[#allocation2 + $0x204] sm:$0xf]  ;;  %v3602_v45 = vor.u32 %v4641_v33, %v3599_v35 }
  0x68   : > { %2080 = vmatpush.bf16.msra.mxu2 %v3506_v7  ;;  %v3327_v43 = vld [vmem:[#allocation2 + $0x110] sm:$0xf0]  ;;  %v4637_v47 = vld [vmem:[#allocation2 + $0x304] sm:$0xf]  ;;  %v3202_v52 = vor.u32 %v4541_v37, %v3199_v39 }
  0x69   : > { %2093 = vmatpush.bf16.msra.mxu3 %v3634_v11  ;;  %v3455_v46 = vld [vmem:[#allocation2 + $0x210] sm:$0xf0]  ;;  %v4697_v49 = vld [vmem:[#allocation2 + $0x4e4] sm:$0xf]  ;;  %v3330_v56 = vor.u32 %v4573_v42, %v3327_v43 }
  0x6a   : > { %2055 = vmatpush.bf16.msra.mxu0 %v3234_v17  ;;  %v3583_v48 = vld [vmem:[#allocation2 + $0x310] sm:$0xf0]  ;;  %v4729_v51 = vld [vmem:[#allocation2 + $0x5e4] sm:$0xf]  ;;  %v3458_v57 = vor.u32 %v4605_v44, %v3455_v46 }
  0x6b   : > { %2068 = vmatpush.bf16.msra.mxu1 %v3362_v18  ;;  %v3823_v50 = vld [vmem:[#allocation2 + $0x4f0] sm:$0xf0]  ;;  %v4761_v54 = vld [vmem:[#allocation2 + $0x6e4] sm:$0xf]  ;;  %v3586_v60 = vor.u32 %v4637_v47, %v3583_v48 }
  0x6c   : > { %2081 = vmatpush.bf16.msra.mxu2 %v3490_v19  ;;  %v3951_v53 = vld [vmem:[#allocation2 + $0x5f0] sm:$0xf0]  ;;  %v4793_v58 = vld [vmem:[#allocation2 + $0x7e4] sm:$0xf]  ;;  %v3826_v61 = vor.u32 %v4697_v49, %v3823_v50 }
  0x6d   : > { %2094 = vmatpush.bf16.msra.mxu3 %v3618_v23  ;;  %v4079_v55 = vld [vmem:[#allocation2 + $0x6f0] sm:$0xf0]  ;;  %v3954_v62 = vor.u32 %v4729_v51, %v3951_v53  ;;  %v4693_v0 = vld [vmem:[#allocation2 + $0x4c4] sm:$0xf] }
  0x6e   : > { %2056 = vmatpush.bf16.msra.mxu0 %v3218_v36  ;;  %v4207_v59 = vld [vmem:[#allocation2 + $0x7f0] sm:$0xf0]  ;;  %v4082_v63 = vor.u32 %v4761_v54, %v4079_v55  ;;  %v4725_v2 = vld [vmem:[#allocation2 + $0x5c4] sm:$0xf] }
  0x6f   : > { %2069 = vmatpush.bf16.msra.mxu1 %v3346_v40  ;;  %v3807_v1 = vld [vmem:[#allocation2 + $0x4d0] sm:$0xf0]  ;;  %v4210_v3 = vor.u32 %v4793_v58, %v4207_v59  ;;  %v4757_v5 = vld [vmem:[#allocation2 + $0x6c4] sm:$0xf] }
  0x70   : > { %2082 = vmatpush.bf16.msra.mxu2 %v3474_v41  ;;  %v3935_v4 = vld [vmem:[#allocation2 + $0x5d0] sm:$0xf0]  ;;  %v4789_v7 = vld [vmem:[#allocation2 + $0x7c4] sm:$0xf]  ;;  %v3810_v9 = vor.u32 %v4693_v0, %v3807_v1 }
  0x71   : > { %2095 = vmatpush.bf16.msra.mxu3 %v3602_v45  ;;  %v4063_v6 = vld [vmem:[#allocation2 + $0x6d0] sm:$0xf0]  ;;  %v3938_v10 = vor.u32 %v4725_v2, %v3935_v4  ;;  %v4689_v12 = vld [vmem:[#allocation2 + $0x4a4] sm:$0xf] }
  0x72   : > { %2057 = vmatpush.bf16.msra.mxu0 %v3202_v52  ;;  %v4191_v8 = vld [vmem:[#allocation2 + $0x7d0] sm:$0xf0]  ;;  %v4066_v11 = vor.u32 %v4757_v5, %v4063_v6  ;;  %v4721_v14 = vld [vmem:[#allocation2 + $0x5a4] sm:$0xf] }
  0x73   : > { %2070 = vmatpush.bf16.msra.mxu1 %v3330_v56  ;;  %v3791_v13 = vld [vmem:[#allocation2 + $0x4b0] sm:$0xf0]  ;;  %v4194_v15 = vor.u32 %v4789_v7, %v4191_v8  ;;  %v4753_v17 = vld [vmem:[#allocation2 + $0x6a4] sm:$0xf] }
  0x74   : > { %2083 = vmatpush.bf16.msra.mxu2 %v3458_v57  ;;  %v3919_v16 = vld [vmem:[#allocation2 + $0x5b0] sm:$0xf0]  ;;  %v4785_v19 = vld [vmem:[#allocation2 + $0x7a4] sm:$0xf]  ;;  %v3794_v21 = vor.u32 %v4689_v12, %v3791_v13 }
  0x75   : > { %2096 = vmatpush.bf16.msra.mxu3 %v3586_v60  ;;  %v4047_v18 = vld [vmem:[#allocation2 + $0x6b0] sm:$0xf0]  ;;  %2058 = vmatmul.bf16.vlgmr.msra.gmra.mxu0 %v5098_v28  ;;  %v3922_v22 = vor.u32 %v4721_v14, %v3919_v16  ;;  %v4685_v24 = vld [vmem:[#allocation2 + $0x484] sm:$0xf] }
  0x76   : > { %2102 = vmatpush.bf16.msrb.mxu0 %v3826_v61  ;;  %v4175_v20 = vld [vmem:[#allocation2 + $0x7b0] sm:$0xf0]  ;;  %2071 = vmatmul.bf16.vlgmr.msra.gmra.mxu1 %v5102_v34  ;;  %v4050_v23 = vor.u32 %v4753_v17, %v4047_v18  ;;  %v4717_v30 = vld [vmem:[#allocation2 + $0x584] sm:$0xf] }
  0x77   : > { %2115 = vmatpush.bf16.msrb.mxu1 %v3954_v62  ;;  %2084 = vmatmul.bf16.vlgmr.msra.gmra.mxu2 %v5096_v27  ;;  %v3775_v26 = vld [vmem:[#allocation2 + $0x490] sm:$0xf0]  ;;  %v4178_v33 = vor.u32 %v4785_v19, %v4175_v20  ;;  %v4749_v36 = vld [vmem:[#allocation2 + $0x684] sm:$0xf] }
  0x78   : > { %2128 = vmatpush.bf16.msrb.mxu2 %v4082_v63  ;;  %2097 = vmatmul.bf16.vlgmr.msra.gmra.mxu3 %v5100_v29  ;;  %v3903_v35 = vld [vmem:[#allocation2 + $0x590] sm:$0xf0]  ;;  %v4781_v39 = vld [vmem:[#allocation2 + $0x784] sm:$0xf]  ;;  %v3778_v41 = vor.u32 %v4685_v24, %v3775_v26  ;;  %v3317_v26 = vld [vmem:[#allocation2 + $0xe8] sm:$0xf] }
  0x79   : > { %2141 = vmatpush.bf16.msrb.mxu3 %v4210_v3  ;;  %v4031_v37 = vld [vmem:[#allocation2 + $0x690] sm:$0xf0]  ;;  %v3906_v42 = vor.u32 %v4717_v30, %v3903_v35  ;;  %v4681_v44 = vld [vmem:[#allocation2 + $0x464] sm:$0xf]  ;;  %v4572_v30 = vld [vmem:[#allocation2 + $0xf4] sm:$0xf0] }
  0x7a   : > { %2103 = vmatpush.bf16.msrb.mxu0 %v3810_v9  ;;  %v4159_v40 = vld [vmem:[#allocation2 + $0x790] sm:$0xf0]  ;;  %v4034_v43 = vor.u32 %v4749_v36, %v4031_v37  ;;  %v4713_v46 = vld [vmem:[#allocation2 + $0x564] sm:$0xf]  ;;  %v4604_v36 = vld [vmem:[#allocation2 + $0x1f4] sm:$0xf0] }
  0x7b   : > { %2116 = vmatpush.bf16.msrb.mxu1 %v3938_v10  ;;  %v3759_v45 = vld [vmem:[#allocation2 + $0x470] sm:$0xf0]  ;;  %v4162_v47 = vor.u32 %v4781_v39, %v4159_v40  ;;  %v4745_v49 = vld [vmem:[#allocation2 + $0x664] sm:$0xf]  ;;  %v3573_v37 = vld [vmem:[#allocation2 + $0x2e8] sm:$0xf] }
  0x7c   : > { %2129 = vmatpush.bf16.msrb.mxu2 %v4066_v11  ;;  %v3887_v48 = vld [vmem:[#allocation2 + $0x570] sm:$0xf0]  ;;  %v4777_v51 = vld [vmem:[#allocation2 + $0x764] sm:$0xf]  ;;  %v3762_v53 = vor.u32 %v4681_v44, %v3759_v45  ;;  %v4636_v39 = vld [vmem:[#allocation2 + $0x2f4] sm:$0xf0]  ;;  %v3318_v45 = vor.u32 %v4572_v30, %v3317_v26 }
  0x7d   : > { %2142 = vmatpush.bf16.msrb.mxu3 %v4194_v15  ;;  %v4015_v50 = vld [vmem:[#allocation2 + $0x670] sm:$0xf0]  ;;  %v3890_v54 = vor.u32 %v4713_v46, %v3887_v48  ;;  %v4677_v56 = vld [vmem:[#allocation2 + $0x444] sm:$0xf]  ;;  %v3301_v48 = vld [vmem:[#allocation2 + $0xc8] sm:$0xf] }
  0x7e   : > { %2104 = vmatpush.bf16.msrb.mxu0 %v3794_v21  ;;  %v4143_v52 = vld [vmem:[#allocation2 + $0x770] sm:$0xf0]  ;;  %v4018_v55 = vor.u32 %v4745_v49, %v4015_v50  ;;  %v4709_v58 = vld [vmem:[#allocation2 + $0x544] sm:$0xf]  ;;  %v4568_v49 = vld [vmem:[#allocation2 + $0xd4] sm:$0xf0] }
  0x7f   : > { %2117 = vmatpush.bf16.msrb.mxu1 %v3922_v22  ;;  %v3743_v57 = vld [vmem:[#allocation2 + $0x450] sm:$0xf0]  ;;  %v4146_v59 = vor.u32 %v4777_v51, %v4143_v52  ;;  %v4741_v61 = vld [vmem:[#allocation2 + $0x644] sm:$0xf]  ;;  %v3429_v50 = vld [vmem:[#allocation2 + $0x1c8] sm:$0xf] }
  0x80   : > { %2130 = vmatpush.bf16.msrb.mxu2 %v4050_v23  ;;  %v3871_v60 = vld [vmem:[#allocation2 + $0x550] sm:$0xf0]  ;;  %v4773_v63 = vld [vmem:[#allocation2 + $0x744] sm:$0xf]  ;;  %v3746_v1 = vor.u32 %v4677_v56, %v3743_v57  ;;  %v4600_v52 = vld [vmem:[#allocation2 + $0x1d4] sm:$0xf0]  ;;  %v3302_v57 = vor.u32 %v4568_v49, %v3301_v48 }
  0x81   : > { %2143 = vmatpush.bf16.msrb.mxu3 %v4178_v33  ;;  %v3999_v62 = vld [vmem:[#allocation2 + $0x650] sm:$0xf0]  ;;  %v3874_v2 = vor.u32 %v4709_v58, %v3871_v60  ;;  %v4673_v4 = vld [vmem:[#allocation2 + $0x424] sm:$0xf]  ;;  %v3445_v33 = vld [vmem:[#allocation2 + $0x1e8] sm:$0xf]  ;;  %v3430_v58 = vor.u32 %v4600_v52, %v3429_v50 }
  0x82   : > { %2105 = vmatpush.bf16.msrb.mxu0 %v3778_v41  ;;  %v4127_v0 = vld [vmem:[#allocation2 + $0x750] sm:$0xf0]  ;;  %v4002_v3 = vor.u32 %v4741_v61, %v3999_v62  ;;  %v4705_v6 = vld [vmem:[#allocation2 + $0x524] sm:$0xf]  ;;  %v3446_v46 = vor.u32 %v4604_v36, %v3445_v33  ;;  %v4664_v56 = vld [vmem:[#allocation2 + $0x3d4] sm:$0xf0] }
  0x83   : > { %2118 = vmatpush.bf16.msrb.mxu1 %v3906_v42  ;;  %v3727_v5 = vld [vmem:[#allocation2 + $0x430] sm:$0xf0]  ;;  %v4130_v7 = vor.u32 %v4773_v63, %v4127_v0  ;;  %v4737_v9 = vld [vmem:[#allocation2 + $0x624] sm:$0xf]  ;;  %v3701_v42 = vld [vmem:[#allocation2 + $0x3e8] sm:$0xf] }
  0x84   : > { %2131 = vmatpush.bf16.msrb.mxu2 %v4034_v43  ;;  %v3855_v8 = vld [vmem:[#allocation2 + $0x530] sm:$0xf0]  ;;  %v4769_v11 = vld [vmem:[#allocation2 + $0x724] sm:$0xf]  ;;  %v3730_v13 = vor.u32 %v4673_v4, %v3727_v5  ;;  %v4668_v43 = vld [vmem:[#allocation2 + $0x3f4] sm:$0xf0] }
  0x85   : > { %2144 = vmatpush.bf16.msrb.mxu3 %v4162_v47  ;;  %v3983_v10 = vld [vmem:[#allocation2 + $0x630] sm:$0xf0]  ;;  %v4669_v14 = vld [vmem:[#allocation2 + $0x404] sm:$0xf]  ;;  %v3858_v16 = vor.u32 %v4705_v6, %v3855_v8  ;;  %v3574_v47 = vor.u32 %v4636_v39, %v3573_v37  ;;  %v3702_v51 = vor.u32 %v4668_v43, %v3701_v42  ;;  %v3285_v60 = vld [vmem:[#allocation2 + $0xa8] sm:$0xf] }
  0x86   : > { %2106 = vmatpush.bf16.msrb.mxu0 %v3762_v53  ;;  %v4111_v12 = vld [vmem:[#allocation2 + $0x730] sm:$0xf0]  ;;  %v3986_v17 = vor.u32 %v4737_v9, %v3983_v10  ;;  %v4701_v18 = vld [vmem:[#allocation2 + $0x504] sm:$0xf]  ;;  %v3557_v53 = vld [vmem:[#allocation2 + $0x2c8] sm:$0xf] }
  0x87   : > { %2119 = vmatpush.bf16.msrb.mxu1 %v3890_v54  ;;  %v3711_v15 = vld [vmem:[#allocation2 + $0x410] sm:$0xf0]  ;;  %v4733_v20 = vld [vmem:[#allocation2 + $0x604] sm:$0xf]  ;;  %v4114_v21 = vor.u32 %v4769_v11, %v4111_v12  ;;  %v4632_v54 = vld [vmem:[#allocation2 + $0x2d4] sm:$0xf0] }
  0x88   : > { %2132 = vmatpush.bf16.msrb.mxu2 %v4018_v55  ;;  %v3839_v19 = vld [vmem:[#allocation2 + $0x510] sm:$0xf0]  ;;  %v4765_v23 = vld [vmem:[#allocation2 + $0x704] sm:$0xf]  ;;  %v3714_v35 = vor.u32 %v4669_v14, %v3711_v15  ;;  %v3685_v55 = vld [vmem:[#allocation2 + $0x3c8] sm:$0xf] }
  0x89   : > { %2145 = vmatpush.bf16.msrb.mxu3 %v4146_v59  ;;  %v3967_v22 = vld [vmem:[#allocation2 + $0x610] sm:$0xf0]  ;;  %v3842_v40 = vor.u32 %v4701_v18, %v3839_v19  ;;  %v3558_v59 = vor.u32 %v4632_v54, %v3557_v53  ;;  %v4564_v61 = vld [vmem:[#allocation2 + $0xb4] sm:$0xf0]  ;;  %v3413_v62 = vld [vmem:[#allocation2 + $0x1a8] sm:$0xf]  ;;  %v3686_v63 = vor.u32 %v4664_v56, %v3685_v55 }
  0x8a   : > { %2107 = vmatpush.bf16.msrb.mxu0 %v3746_v1  ;;  %v4095_v24 = vld [vmem:[#allocation2 + $0x710] sm:$0xf0]  ;;  %v3970_v41 = vor.u32 %v4733_v20, %v3967_v22  ;;  %v4596_v0 = vld [vmem:[#allocation2 + $0x1b4] sm:$0xf0]  ;;  %v3541_v1 = vld [vmem:[#allocation2 + $0x2a8] sm:$0xf]  ;;  %v3286_v5 = vor.u32 %v4564_v61, %v3285_v60 }
  0x8b   : > { %2120 = vmatpush.bf16.msrb.mxu1 %v3874_v2  ;;  %v4098_v44 = vor.u32 %v4765_v23, %v4095_v24  ;;  %v4628_v2 = vld [vmem:[#allocation2 + $0x2b4] sm:$0xf0]  ;;  %v3414_v6 = vor.u32 %v4596_v0, %v3413_v62  ;;  %v3269_v8 = vld [vmem:[#allocation2 + $0x88] sm:$0xf] }
  0x8c   : > { %2133 = vmatpush.bf16.msrb.mxu2 %v4002_v3  ;;  %v3669_v3 = vld [vmem:[#allocation2 + $0x3a8] sm:$0xf]  ;;  %v4660_v4 = vld [vmem:[#allocation2 + $0x3b4] sm:$0xf0] }
  0x8d   : > { %2146 = vmatpush.bf16.msrb.mxu3 %v4130_v7  ;;  %v3542_v7 = vor.u32 %v4628_v2, %v3541_v1  ;;  %v3397_v9 = vld [vmem:[#allocation2 + $0x188] sm:$0xf]  ;;  %v3670_v10 = vor.u32 %v4660_v4, %v3669_v3  ;;  %v4592_v11 = vld [vmem:[#allocation2 + $0x194] sm:$0xf0] }
  0x8e   : > { %2108 = vmatpush.bf16.msrb.mxu0 %v3730_v13  ;;  %v3525_v12 = vld [vmem:[#allocation2 + $0x288] sm:$0xf]  ;;  %v4588_v20 = vld [vmem:[#allocation2 + $0x174] sm:$0xf0] }
  0x8f   : > { %2121 = vmatpush.bf16.msrb.mxu1 %v3858_v16  ;;  %v3653_v13 = vld [vmem:[#allocation2 + $0x388] sm:$0xf]  ;;  %v4620_v22 = vld [vmem:[#allocation2 + $0x274] sm:$0xf0] }
  0x90   : > { %2134 = vmatpush.bf16.msrb.mxu2 %v3986_v17  ;;  %v3253_v16 = vld [vmem:[#allocation2 + $0x68] sm:$0xf]  ;;  %v4556_v17 = vld [vmem:[#allocation2 + $0x74] sm:$0xf0] }
  0x91   : > { %2147 = vmatpush.bf16.msrb.mxu3 %v4114_v21  ;;  %v3381_v18 = vld [vmem:[#allocation2 + $0x168] sm:$0xf]  ;;  %v4652_v24 = vld [vmem:[#allocation2 + $0x374] sm:$0xf0]  ;;  %v3254_v26 = vor.u32 %v4556_v17, %v3253_v16 }
  0x92   : > { %2109 = vmatpush.bf16.msrb.mxu0 %v3714_v35  ;;  %v3509_v21 = vld [vmem:[#allocation2 + $0x268] sm:$0xf]  ;;  %v3382_v30 = vor.u32 %v4588_v20, %v3381_v18  ;;  %v4552_v36 = vld [vmem:[#allocation2 + $0x54] sm:$0xf0] }
  0x93   : > { %2122 = vmatpush.bf16.msrb.mxu1 %v3842_v40  ;;  %v3637_v23 = vld [vmem:[#allocation2 + $0x368] sm:$0xf]  ;;  %v3510_v33 = vor.u32 %v4620_v22, %v3509_v21  ;;  %v4584_v40 = vld [vmem:[#allocation2 + $0x154] sm:$0xf0] }
  0x94   : > { %2135 = vmatpush.bf16.msrb.mxu2 %v3970_v41  ;;  %v3237_v35 = vld [vmem:[#allocation2 + $0x48] sm:$0xf]  ;;  %v3638_v39 = vor.u32 %v4652_v24, %v3637_v23  ;;  %v4616_v42 = vld [vmem:[#allocation2 + $0x254] sm:$0xf0] }
  0x95   : > { %2148 = vmatpush.bf16.msrb.mxu3 %v4098_v44  ;;  %2110 = vmatmul.bf16.vlgmr.msrb.gmra.mxu0 %v5110_v31  ;;  %v4624_v31 = vld [vmem:[#allocation2 + $0x294] sm:$0xf0]  ;;  %v3365_v37 = vld [vmem:[#allocation2 + $0x148] sm:$0xf] }
  0x96   : > { %2154 = vmatpush.bf16.msra.mxu0 %v3318_v45  ;;  %2123 = vmatmul.bf16.vlgmr.msrb.gmra.mxu1 %v5114_v38  ;;  %v3398_v38 = vor.u32 %v4592_v11, %v3397_v9  ;;  %v3526_v15 = vor.u32 %v4624_v31, %v3525_v12  ;;  %v3493_v41 = vld [vmem:[#allocation2 + $0x248] sm:$0xf]  ;;  %v4648_v44 = vld [vmem:[#allocation2 + $0x354] sm:$0xf0]  ;;  %v3238_v45 = vor.u32 %v4552_v36, %v3237_v35 }
  0x97   : > { %2167 = vmatpush.bf16.msra.mxu1 %v3446_v46  ;;  %2136 = vmatmul.bf16.vlgmr.msrb.gmra.mxu2 %v5108_v25  ;;  %v4560_v25 = vld [vmem:[#allocation2 + $0x94] sm:$0xf0]  ;;  %v3621_v43 = vld [vmem:[#allocation2 + $0x348] sm:$0xf]  ;;  %v3366_v46 = vor.u32 %v4584_v40, %v3365_v37 }
  0x98   : > { %2180 = vmatpush.bf16.msra.mxu2 %v3574_v47  ;;  %2149 = vmatmul.bf16.vlgmr.msrb.gmra.mxu3 %v5112_v32  ;;  %v4656_v32 = vld [vmem:[#allocation2 + $0x394] sm:$0xf0]  ;;  %v3270_v14 = vor.u32 %v4560_v25, %v3269_v8  ;;  %v3494_v47 = vor.u32 %v4616_v42, %v3493_v41  ;;  %v3221_v48 = vld [vmem:[#allocation2 + $0x28] sm:$0xf] }
  0x99   : > { %2193 = vmatpush.bf16.msra.mxu3 %v3702_v51  ;;  %v3654_v19 = vor.u32 %v4656_v32, %v3653_v13  ;;  %v4548_v49 = vld [vmem:[#allocation2 + $0x34] sm:$0xf0]  ;;  %v3349_v50 = vld [vmem:[#allocation2 + $0x128] sm:$0xf]  ;;  %v3622_v51 = vor.u32 %v4648_v44, %v3621_v43 }
  0x9a   : > { %2155 = vmatpush.bf16.msra.mxu0 %v3302_v57  ;;  %v4580_v52 = vld [vmem:[#allocation2 + $0x134] sm:$0xf0]  ;;  %v3477_v53 = vld [vmem:[#allocation2 + $0x228] sm:$0xf]  ;;  %v3222_v57 = vor.u32 %v4548_v49, %v3221_v48 }
  0x9b   : > { %2168 = vmatpush.bf16.msra.mxu1 %v3430_v58  ;;  %v4612_v54 = vld [vmem:[#allocation2 + $0x234] sm:$0xf0]  ;;  %v3605_v55 = vld [vmem:[#allocation2 + $0x328] sm:$0xf]  ;;  %v3350_v60 = vor.u32 %v4580_v52, %v3349_v50 }
  0x9c   : > { %2181 = vmatpush.bf16.msra.mxu2 %v3558_v59  ;;  %v4644_v56 = vld [vmem:[#allocation2 + $0x334] sm:$0xf0]  ;;  %v3205_v58 = vld [vmem:[#allocation2 + $0x8] sm:$0xf]  ;;  %v3478_v61 = vor.u32 %v4612_v54, %v3477_v53 }
  0x9d   : > { %2194 = vmatpush.bf16.msra.mxu3 %v3686_v63  ;;  %v4544_v59 = vld [vmem:[#allocation2 + $0x14] sm:$0xf0]  ;;  %v3333_v62 = vld [vmem:[#allocation2 + $0x108] sm:$0xf]  ;;  %v3606_v1 = vor.u32 %v4644_v56, %v3605_v55 }
  0x9e   : > { %2156 = vmatpush.bf16.msra.mxu0 %v3286_v5  ;;  %v4576_v63 = vld [vmem:[#allocation2 + $0x114] sm:$0xf0]  ;;  %v3461_v0 = vld [vmem:[#allocation2 + $0x208] sm:$0xf]  ;;  %v3206_v8 = vor.u32 %v4544_v59, %v3205_v58 }
  0x9f   : > { %2169 = vmatpush.bf16.msra.mxu1 %v3414_v6  ;;  %v4608_v2 = vld [vmem:[#allocation2 + $0x214] sm:$0xf0]  ;;  %v3589_v3 = vld [vmem:[#allocation2 + $0x308] sm:$0xf]  ;;  %v3334_v11 = vor.u32 %v4576_v63, %v3333_v62 }
  0xa0   : > { %2182 = vmatpush.bf16.msra.mxu2 %v3542_v7  ;;  %v4640_v4 = vld [vmem:[#allocation2 + $0x314] sm:$0xf0]  ;;  %v3829_v5 = vld [vmem:[#allocation2 + $0x4e8] sm:$0xf]  ;;  %v3462_v12 = vor.u32 %v4608_v2, %v3461_v0 }
  0xa1   : > { %2195 = vmatpush.bf16.msra.mxu3 %v3670_v10  ;;  %v4700_v6 = vld [vmem:[#allocation2 + $0x4f4] sm:$0xf0]  ;;  %v3957_v7 = vld [vmem:[#allocation2 + $0x5e8] sm:$0xf]  ;;  %v3590_v32 = vor.u32 %v4640_v4, %v3589_v3 }
  0xa2   : > { %2157 = vmatpush.bf16.msra.mxu0 %v3270_v14  ;;  %v4732_v25 = vld [vmem:[#allocation2 + $0x5f4] sm:$0xf0]  ;;  %v4085_v9 = vld [vmem:[#allocation2 + $0x6e8] sm:$0xf]  ;;  %v3830_v14 = vor.u32 %v4700_v6, %v3829_v5 }
  0xa3   : > { %2170 = vmatpush.bf16.msra.mxu1 %v3398_v38  ;;  %v4764_v10 = vld [vmem:[#allocation2 + $0x6f4] sm:$0xf0]  ;;  %v4213_v31 = vld [vmem:[#allocation2 + $0x7e8] sm:$0xf]  ;;  %v3958_v38 = vor.u32 %v4732_v25, %v3957_v7 }
  0xa4   : > { %2183 = vmatpush.bf16.msra.mxu2 %v3526_v15  ;;  %v4796_v13 = vld [vmem:[#allocation2 + $0x7f4] sm:$0xf0]  ;;  %v4086_v15 = vor.u32 %v4764_v10, %v4085_v9  ;;  %v3813_v16 = vld [vmem:[#allocation2 + $0x4c8] sm:$0xf] }
  0xa5   : > { %2196 = vmatpush.bf16.msra.mxu3 %v3654_v19  ;;  %v4696_v17 = vld [vmem:[#allocation2 + $0x4d4] sm:$0xf0]  ;;  %v3941_v18 = vld [vmem:[#allocation2 + $0x5c8] sm:$0xf]  ;;  %v4214_v19 = vor.u32 %v4796_v13, %v4213_v31 }
  0xa6   : > { %2158 = vmatpush.bf16.msra.mxu0 %v3254_v26  ;;  %v4728_v20 = vld [vmem:[#allocation2 + $0x5d4] sm:$0xf0]  ;;  %v4069_v21 = vld [vmem:[#allocation2 + $0x6c8] sm:$0xf]  ;;  %v3814_v26 = vor.u32 %v4696_v17, %v3813_v16 }
  0xa7   : > { %2171 = vmatpush.bf16.msra.mxu1 %v3382_v30  ;;  %v4760_v22 = vld [vmem:[#allocation2 + $0x6d4] sm:$0xf0]  ;;  %v4197_v23 = vld [vmem:[#allocation2 + $0x7c8] sm:$0xf]  ;;  %v3942_v30 = vor.u32 %v4728_v20, %v3941_v18 }
  0xa8   : > { %2184 = vmatpush.bf16.msra.mxu2 %v3510_v33  ;;  %v4792_v24 = vld [vmem:[#allocation2 + $0x7d4] sm:$0xf0]  ;;  %v4070_v33 = vor.u32 %v4760_v22, %v4069_v21  ;;  %v3797_v35 = vld [vmem:[#allocation2 + $0x4a8] sm:$0xf] }
  0xa9   : > { %2197 = vmatpush.bf16.msra.mxu3 %v3638_v39  ;;  %v4692_v36 = vld [vmem:[#allocation2 + $0x4b4] sm:$0xf0]  ;;  %v3925_v37 = vld [vmem:[#allocation2 + $0x5a8] sm:$0xf]  ;;  %v4198_v39 = vor.u32 %v4792_v24, %v4197_v23 }
  0xaa   : > { %2159 = vmatpush.bf16.msra.mxu0 %v3238_v45  ;;  %v4724_v40 = vld [vmem:[#allocation2 + $0x5b4] sm:$0xf0]  ;;  %v4053_v41 = vld [vmem:[#allocation2 + $0x6a8] sm:$0xf]  ;;  %v3798_v45 = vor.u32 %v4692_v36, %v3797_v35 }
  0xab   : > { %2172 = vmatpush.bf16.msra.mxu1 %v3366_v46  ;;  %v4756_v42 = vld [vmem:[#allocation2 + $0x6b4] sm:$0xf0]  ;;  %v4181_v43 = vld [vmem:[#allocation2 + $0x7a8] sm:$0xf]  ;;  %v3926_v46 = vor.u32 %v4724_v40, %v3925_v37 }
  0xac   : > { %2185 = vmatpush.bf16.msra.mxu2 %v3494_v47  ;;  %v4788_v44 = vld [vmem:[#allocation2 + $0x7b4] sm:$0xf0]  ;;  %v4054_v47 = vor.u32 %v4756_v42, %v4053_v41  ;;  %v3781_v48 = vld [vmem:[#allocation2 + $0x488] sm:$0xf] }
  0xad   : > { %2198 = vmatpush.bf16.msra.mxu3 %v3622_v51  ;;  %v4688_v49 = vld [vmem:[#allocation2 + $0x494] sm:$0xf0]  ;;  %v3909_v50 = vld [vmem:[#allocation2 + $0x588] sm:$0xf]  ;;  %v4182_v51 = vor.u32 %v4788_v44, %v4181_v43 }
  0xae   : > { %2160 = vmatpush.bf16.msra.mxu0 %v3222_v57  ;;  %v4037_v52 = vld [vmem:[#allocation2 + $0x688] sm:$0xf]  ;;  %v4752_v53 = vld [vmem:[#allocation2 + $0x694] sm:$0xf0] }
  0xaf   : > { %2173 = vmatpush.bf16.msra.mxu1 %v3350_v60  ;;  %v4165_v54 = vld [vmem:[#allocation2 + $0x788] sm:$0xf]  ;;  %v4684_v57 = vld [vmem:[#allocation2 + $0x474] sm:$0xf0] }
  0xb0   : > { %2186 = vmatpush.bf16.msra.mxu2 %v3478_v61  ;;  %v3765_v56 = vld [vmem:[#allocation2 + $0x468] sm:$0xf]  ;;  %v4716_v60 = vld [vmem:[#allocation2 + $0x574] sm:$0xf0] }
  0xb1   : > { %2199 = vmatpush.bf16.msra.mxu3 %v3606_v1  ;;  %v3893_v58 = vld [vmem:[#allocation2 + $0x568] sm:$0xf]  ;;  %v4748_v62 = vld [vmem:[#allocation2 + $0x674] sm:$0xf0]  ;;  %v3766_v1 = vor.u32 %v4684_v57, %v3765_v56 }
  0xb2   : > { %2161 = vmatpush.bf16.msra.mxu0 %v3206_v8  ;;  %v4021_v61 = vld [vmem:[#allocation2 + $0x668] sm:$0xf]  ;;  %v4780_v0 = vld [vmem:[#allocation2 + $0x774] sm:$0xf0]  ;;  %v3894_v3 = vor.u32 %v4716_v60, %v3893_v58 }
  0xb3   : > { %2174 = vmatpush.bf16.msra.mxu1 %v3334_v11  ;;  %v4149_v63 = vld [vmem:[#allocation2 + $0x768] sm:$0xf]  ;;  %v4022_v4 = vor.u32 %v4748_v62, %v4021_v61  ;;  %v4680_v5 = vld [vmem:[#allocation2 + $0x454] sm:$0xf0]  ;;  %v4566_v61 = vld [vmem:[#allocation2 + $0xcc] sm:$0xf] }
  0xb4   : > { %2187 = vmatpush.bf16.msra.mxu2 %v3462_v12  ;;  %v3749_v2 = vld [vmem:[#allocation2 + $0x448] sm:$0xf]  ;;  %v4712_v7 = vld [vmem:[#allocation2 + $0x554] sm:$0xf0]  ;;  %v4150_v8 = vor.u32 %v4780_v0, %v4149_v63  ;;  %v3303_v62 = vld [vmem:[#allocation2 + $0xd8] sm:$0xf0] }
  0xb5   : > { %2200 = vmatpush.bf16.msra.mxu3 %v3590_v32  ;;  %2162 = vmatmul.bf16.vlgmr.msra.gmra.mxu0 %v5098_v28  ;;  %v4784_v28 = vld [vmem:[#allocation2 + $0x794] sm:$0xf0]  ;;  %v3877_v6 = vld [vmem:[#allocation2 + $0x548] sm:$0xf]  ;;  %v3750_v31 = vor.u32 %v4680_v5, %v3749_v2  ;;  %v4598_v63 = vld [vmem:[#allocation2 + $0x1cc] sm:$0xf] }
  0xb6   : > { %2206 = vmatpush.bf16.msrb.mxu0 %v3830_v14  ;;  %2175 = vmatmul.bf16.vlgmr.msra.gmra.mxu1 %v5102_v34  ;;  %v4038_v34 = vor.u32 %v4752_v53, %v4037_v52  ;;  %v4166_v59 = vor.u32 %v4784_v28, %v4165_v54  ;;  %v4005_v25 = vld [vmem:[#allocation2 + $0x648] sm:$0xf]  ;;  %v4744_v9 = vld [vmem:[#allocation2 + $0x654] sm:$0xf0]  ;;  %v3878_v32 = vor.u32 %v4712_v7, %v3877_v6  ;;  %v3575_v52 = vld [vmem:[#allocation2 + $0x2f8] sm:$0xf0] }
  0xb7   : > { %2219 = vmatpush.bf16.msrb.mxu1 %v3958_v38  ;;  %2188 = vmatmul.bf16.vlgmr.msra.gmra.mxu2 %v5096_v27  ;;  %v4720_v27 = vld [vmem:[#allocation2 + $0x594] sm:$0xf0]  ;;  %v4133_v11 = vld [vmem:[#allocation2 + $0x748] sm:$0xf]  ;;  %v4006_v14 = vor.u32 %v4744_v9, %v4005_v25  ;;  %v4666_v28 = vld [vmem:[#allocation2 + $0x3ec] sm:$0xf]  ;;  %v3306_v25 = vor.u32 %v4566_v61, %v3303_v62 }
  0xb8   : > { %2232 = vmatpush.bf16.msrb.mxu2 %v4086_v15  ;;  %2201 = vmatmul.bf16.vlgmr.msra.gmra.mxu3 %v5100_v29  ;;  %v3782_v29 = vor.u32 %v4688_v49, %v3781_v48  ;;  %v3910_v55 = vor.u32 %v4720_v27, %v3909_v50  ;;  %v5135_v10 = vld [vmem:[%s5271_s2] sm:$0xf]  ;;  %v3733_v13 = vld [vmem:[#allocation2 + $0x428] sm:$0xf]  ;;  %v4602_v48 = vld [vmem:[#allocation2 + $0x1ec] sm:$0xf] }
  0xb9   : > { %2245 = vmatpush.bf16.msrb.mxu3 %v4214_v19  ;;  %v4776_v12 = vld [vmem:[#allocation2 + $0x754] sm:$0xf0]  ;;  %v3861_v15 = vld [vmem:[#allocation2 + $0x528] sm:$0xf]  ;;  %v1938_v16 = vperm.slane %v5135_v10, 0 }
  0xba   : > { %2207 = vmatpush.bf16.msrb.mxu0 %v3814_v26  ;;  %v4676_v38 = vld [vmem:[#allocation2 + $0x434] sm:$0xf0]  ;;  %v4134_v17 = vor.u32 %v4776_v12, %v4133_v11  ;;  %v3989_v19 = vld [vmem:[#allocation2 + $0x628] sm:$0xf]  ;;  %v4634_v27 = vld [vmem:[#allocation2 + $0x2ec] sm:$0xf] }
  0xbb   : > { %2220 = vmatpush.bf16.msrb.mxu1 %v3942_v30  ;;  %v4708_v18 = vld [vmem:[#allocation2 + $0x534] sm:$0xf0]  ;;  %v4117_v21 = vld [vmem:[#allocation2 + $0x728] sm:$0xf]  ;;  %v3734_v23 = vor.u32 %v4676_v38, %v3733_v13  ;;  %v1955_v30 = vpop.f32.mrf.mxu0  ;;  %v3578_v60 = vor.u32 %v4634_v27, %v3575_v52  ;;  %v4630_v2 = vld [vmem:[#allocation2 + $0x2cc] sm:$0xf] }
  0xbc   : > { %2233 = vmatpush.bf16.msrb.mxu2 %v4070_v33  ;;  %v4740_v20 = vld [vmem:[#allocation2 + $0x634] sm:$0xf0]  ;;  %v3717_v24 = vld [vmem:[#allocation2 + $0x408] sm:$0xf]  ;;  %v3862_v33 = vor.u32 %v4708_v18, %v3861_v15  ;;  %v1956_v40 = vadd.f32 %v1955_v30, %v1938_v16  ;;  %v4662_v6 = vld [vmem:[#allocation2 + $0x3cc] sm:$0xf] }
  0xbd   : > { %2246 = vmatpush.bf16.msrb.mxu3 %v4198_v39  ;;  %v4772_v22 = vld [vmem:[#allocation2 + $0x734] sm:$0xf0]  ;;  %v3990_v35 = vor.u32 %v4740_v20, %v3989_v19  ;;  %v3845_v36 = vld [vmem:[#allocation2 + $0x508] sm:$0xf]  ;;  %v3687_v7 = vld [vmem:[#allocation2 + $0x3d8] sm:$0xf0] }
  0xbe   : > { %2208 = vmatpush.bf16.msrb.mxu0 %v3798_v45  ;;  %v4672_v26 = vld [vmem:[#allocation2 + $0x414] sm:$0xf0]  ;;  %v3973_v39 = vld [vmem:[#allocation2 + $0x608] sm:$0xf]  ;;  %v4118_v42 = vor.u32 %v4772_v22, %v4117_v21  ;;  %v4562_v12 = vld [vmem:[#allocation2 + $0xac] sm:$0xf] }
  0xbf   : > { %2221 = vmatpush.bf16.msrb.mxu1 %v3926_v46  ;;  %v4704_v37 = vld [vmem:[#allocation2 + $0x514] sm:$0xf0]  ;;  %v4101_v44 = vld [vmem:[#allocation2 + $0x708] sm:$0xf]  ;;  %v4570_v46 = vld [vmem:[#allocation2 + $0xec] sm:$0xf]  ;;  %v3718_v50 = vor.u32 %v4672_v26, %v3717_v24 }
  0xc0   : > { %2234 = vmatpush.bf16.msrb.mxu2 %v4054_v47  ;;  %v4736_v43 = vld [vmem:[#allocation2 + $0x614] sm:$0xf0]  ;;  %v3319_v47 = vld [vmem:[#allocation2 + $0xf8] sm:$0xf0]  ;;  %v3846_v53 = vor.u32 %v4704_v37, %v3845_v36  ;;  %v4594_v13 = vld [vmem:[#allocation2 + $0x1ac] sm:$0xf] }
  0xc1   : > { %2247 = vmatpush.bf16.msrb.mxu3 %v4182_v51  ;;  %v4768_v45 = vld [vmem:[#allocation2 + $0x714] sm:$0xf0]  ;;  %v3447_v51 = vld [vmem:[#allocation2 + $0x1f8] sm:$0xf0]  ;;  %v3974_v54 = vor.u32 %v4736_v43, %v3973_v39  ;;  %v3322_v56 = vor.u32 %v4570_v46, %v3319_v47  ;;  %v4626_v15 = vld [vmem:[#allocation2 + $0x2ac] sm:$0xf] }
  0xc2   : > { %2209 = vmatpush.bf16.msrb.mxu0 %v3782_v29  ;;  %v3703_v29 = vld [vmem:[#allocation2 + $0x3f8] sm:$0xf0]  ;;  %v4658_v19 = vld [vmem:[#allocation2 + $0x3ac] sm:$0xf] }
  0xc3   : > { %2222 = vmatpush.bf16.msrb.mxu1 %v3910_v55  ;;  %v3706_v0 = vor.u32 %v4666_v28, %v3703_v29  ;;  %v1957_v5 = vpop.f32.mrf.mxu0  ;;  %v3415_v38 = vld [vmem:[#allocation2 + $0x1b8] sm:$0xf0]  ;;  %v5147_v22 = vld [vmem:[#allocation1 + $0x2d] sm:$0xff] }
  0xc4   : > { %2235 = vmatpush.bf16.msrb.mxu2 %v4038_v34  ;;  %v4102_v34 = vor.u32 %v4768_v45, %v4101_v44  ;;  %v3543_v16 = vld [vmem:[#allocation2 + $0x2b8] sm:$0xf0]  ;;  %v3418_v26 = vor.u32 %v4594_v13, %v3415_v38  ;;  %v4590_v36 = vld [vmem:[#allocation2 + $0x18c] sm:$0xf] }
  0xc5   : > { %2248 = vmatpush.bf16.msrb.mxu3 %v4166_v59  ;;  %v3450_v59 = vor.u32 %v4602_v48, %v3447_v51  ;;  %v5144_v18 = vld [vmem:[#allocation1 + $0x3f] sm:$0xff]  ;;  %v3546_v30 = vor.u32 %v4626_v15, %v3543_v16  ;;  %v4554_v48 = vld [vmem:[#allocation2 + $0x6c] sm:$0xf] }
  0xc6   : > { %2210 = vmatpush.bf16.msrb.mxu0 %v3766_v1  ;;  %v1968_v41 = vpop.f32.mrf.mxu1  ;;  %v3431_v1 = vld [vmem:[#allocation2 + $0x1d8] sm:$0xf0]  ;;  %v4650_v29 = vld [vmem:[#allocation2 + $0x36c] sm:$0xf] }
  0xc7   : > { %2223 = vmatpush.bf16.msrb.mxu1 %v3894_v3  ;;  %v1969_v49 = vadd.f32 %v1968_v41, %v1956_v40  ;;  %v3559_v3 = vld [vmem:[#allocation2 + $0x2d8] sm:$0xf0]  ;;  %v3434_v9 = vor.u32 %v4598_v63, %v3431_v1  ;;  %v4622_v40 = vld [vmem:[#allocation2 + $0x28c] sm:$0xf] }
  0xc8   : > { %2236 = vmatpush.bf16.msrb.mxu2 %v4022_v4  ;;  %v3562_v11 = vor.u32 %v4630_v2, %v3559_v3  ;;  %v3671_v20 = vld [vmem:[#allocation2 + $0x3b8] sm:$0xf0]  ;;  %v4582_v61 = vld [vmem:[#allocation2 + $0x14c] sm:$0xf] }
  0xc9   : > { %2249 = vmatpush.bf16.msrb.mxu3 %v4150_v8  ;;  %v3674_v37 = vor.u32 %v4658_v19, %v3671_v20  ;;  %v3399_v39 = vld [vmem:[#allocation2 + $0x198] sm:$0xf0]  ;;  %v4614_v1 = vld [vmem:[#allocation2 + $0x24c] sm:$0xf] }
  0xca   : > { %2211 = vmatpush.bf16.msrb.mxu0 %v3750_v31  ;;  %v1981_v55 = vpop.f32.mrf.mxu2  ;;  %v1994_v58 = vpop.f32.mrf.mxu3  ;;  %v3287_v31 = vld [vmem:[#allocation2 + $0xb8] sm:$0xf0]  ;;  %v3402_v46 = vor.u32 %v4590_v36, %v3399_v39  ;;  %v4646_v5 = vld [vmem:[#allocation2 + $0x34c] sm:$0xf] }
  0xcb   : > { %2224 = vmatpush.bf16.msrb.mxu1 %v3878_v32  ;;  %v1982_v57 = vadd.f32 %v1981_v55, %v1969_v49  ;;  %v5138_v32 = vld [vmem:[#allocation1 + $0x36] sm:$0xff]  ;;  %v3527_v41 = vld [vmem:[#allocation2 + $0x298] sm:$0xf0] }
  0xcc   : > { %2237 = vmatpush.bf16.msrb.mxu2 %v4006_v14  ;;  %v3690_v14 = vor.u32 %v4662_v6, %v3687_v7  ;;  %v3655_v43 = vld [vmem:[#allocation2 + $0x398] sm:$0xf0]  ;;  %v3530_v47 = vor.u32 %v4622_v40, %v3527_v41  ;;  %v4578_v13 = vld [vmem:[#allocation2 + $0x12c] sm:$0xf] }
  0xcd   : > { %2250 = vmatpush.bf16.msrb.mxu3 %v4134_v17  ;;  %v1995_v4 = vadd.f32 %v1994_v58, %v1982_v57  ;;  %v5141_v17 = vld [vmem:[#allocation1 + $0x24] sm:$0xff]  ;;  %v4610_v16 = vld [vmem:[#allocation2 + $0x22c] sm:$0xf] }
  0xce   : > { %2212 = vmatpush.bf16.msrb.mxu0 %v3734_v23  ;;  %v1970_v8 = vpop.f32.mrf.mxu1  ;;  %v3290_v23 = vor.u32 %v4562_v12, %v3287_v31  ;;  %v3255_v49 = vld [vmem:[#allocation2 + $0x78] sm:$0xf0]  ;;  %v4546_v12 = vld [vmem:[#allocation2 + $0x2c] sm:$0xf] }
  0xcf   : > { %2225 = vmatpush.bf16.msrb.mxu1 %v3862_v33  ;;  %v4558_v33 = vld [vmem:[#allocation2 + $0x8c] sm:$0xf]  ;;  %v3511_v28 = vld [vmem:[#allocation2 + $0x278] sm:$0xf0] }
  0xd0   : > { %2238 = vmatpush.bf16.msrb.mxu2 %v3990_v35  ;;  %v3271_v35 = vld [vmem:[#allocation2 + $0x98] sm:$0xf0]  ;;  %v4642_v20 = vld [vmem:[#allocation2 + $0x32c] sm:$0xf] }
  0xd1   : > { %2251 = vmatpush.bf16.msrb.mxu3 %v4118_v42  ;;  %v4654_v42 = vld [vmem:[#allocation2 + $0x38c] sm:$0xf]  ;;  %v3274_v44 = vor.u32 %v4558_v33, %v3271_v35  ;;  %v3639_v55 = vld [vmem:[#allocation2 + $0x378] sm:$0xf0] }
  0xd2   : > { %2213 = vmatpush.bf16.msrb.mxu0 %v3718_v50  ;;  %v1983_v21 = vpop.f32.mrf.mxu2  ;;  %v1996_v24 = vpop.f32.mrf.mxu3  ;;  %v4586_v50 = vld [vmem:[#allocation2 + $0x16c] sm:$0xf]  ;;  %v3658_v52 = vor.u32 %v4654_v42, %v3655_v43  ;;  %v3642_v63 = vor.u32 %v4650_v29, %v3639_v55  ;;  %v3495_v2 = vld [vmem:[#allocation2 + $0x258] sm:$0xf0] }
  0xd3   : > { %2226 = vmatpush.bf16.msrb.mxu1 %v3846_v53  ;;  %v2007_v45 = vpop.f32.mrf.mxu0  ;;  %v3383_v53 = vld [vmem:[#allocation2 + $0x178] sm:$0xf0]  ;;  %v4542_v24 = vld [vmem:[#allocation2 + $0xc] sm:$0xf] }
  0xd4   : > { %2239 = vmatpush.bf16.msrb.mxu2 %v3974_v54  ;;  %v2008_v51 = vadd.f32 %v2007_v45, %v1995_v4  ;;  %v4618_v54 = vld [vmem:[#allocation2 + $0x26c] sm:$0xf]  ;;  %v3386_v57 = vor.u32 %v4586_v50, %v3383_v53  ;;  %v3623_v6 = vld [vmem:[#allocation2 + $0x358] sm:$0xf0] }
  0xd5   : > { %2252 = vmatpush.bf16.msrb.mxu3 %v4102_v34  ;;  %2214 = vmatmul.bf16.vlgmr.msrb.gmra.mxu0 %v5141_v17  ;;  %v3514_v58 = vor.u32 %v4618_v54, %v3511_v28  ;;  %v3223_v31 = vld [vmem:[#allocation2 + $0x38] sm:$0xf0]  ;;  %v3626_v38 = vor.u32 %v4646_v5, %v3623_v6  ;;  %v4574_v35 = vld [vmem:[#allocation2 + $0x10c] sm:$0xf] }
  0xd6   : > { %2258 = vmatpush.bf16.msra.mxu0 %v3322_v56  ;;  %2227 = vmatmul.bf16.vlgmr.msrb.gmra.mxu1 %v5147_v22  ;;  %v2020_v27 = vpop.f32.mrf.mxu1  ;;  %v3258_v56 = vor.u32 %v4554_v48, %v3255_v49  ;;  %v3351_v15 = vld [vmem:[#allocation2 + $0x138] sm:$0xf0]  ;;  %v4638_v42 = vld [vmem:[#allocation2 + $0x30c] sm:$0xf] }
  0xd7   : > { %2271 = vmatpush.bf16.msra.mxu1 %v3450_v59  ;;  %2240 = vmatmul.bf16.vlgmr.msrb.gmra.mxu2 %v5138_v32  ;;  %v2021_v34 = vadd.f32 %v2020_v27, %v2008_v51  ;;  %v4550_v59 = vld [vmem:[#allocation2 + $0x4c] sm:$0xf]  ;;  %v3479_v19 = vld [vmem:[#allocation2 + $0x238] sm:$0xf0] }
  0xd8   : > { %2284 = vmatpush.bf16.msra.mxu2 %v3578_v60  ;;  %2253 = vmatmul.bf16.vlgmr.msrb.gmra.mxu3 %v5144_v18  ;;  %v3239_v60 = vld [vmem:[#allocation2 + $0x58] sm:$0xf0]  ;;  %v3482_v33 = vor.u32 %v4610_v16, %v3479_v19  ;;  %v4698_v45 = vld [vmem:[#allocation2 + $0x4ec] sm:$0xf]  ;;  %v4917_v16 = vld [vmem:[#allocation1 + $0x9] sm:$0xff] }
  0xd9   : > { %2297 = vmatpush.bf16.msra.mxu3 %v3706_v0  ;;  %v3367_v0 = vld [vmem:[#allocation2 + $0x158] sm:$0xf0]  ;;  %v3242_v7 = vor.u32 %v4550_v59, %v3239_v60  ;;  %v4762_v50 = vld [vmem:[#allocation2 + $0x6ec] sm:$0xf] }
  0xda   : > { %2259 = vmatpush.bf16.msra.mxu0 %v3306_v25  ;;  %v2033_v62 = vpop.f32.mrf.mxu2  ;;  %v3607_v21 = vld [vmem:[#allocation2 + $0x338] sm:$0xf0]  ;;  %v4794_v53 = vld [vmem:[#allocation2 + $0x7ec] sm:$0xf] }
  0xdb   : > { %2272 = vmatpush.bf16.msra.mxu1 %v3434_v9  ;;  %v2034_v3 = vadd.f32 %v2033_v62, %v2021_v34  ;;  %v2046_v4 = vpop.f32.mrf.mxu3  ;;  %v2009_v25 = vpop.f32.mrf.mxu0  ;;  %v3370_v9 = vor.u32 %v4582_v61, %v3367_v0  ;;  %v3335_v36 = vld [vmem:[#allocation2 + $0x118] sm:$0xf0]  ;;  %v3610_v40 = vor.u32 %v4642_v20, %v3607_v21  ;;  %v4758_v61 = vld [vmem:[#allocation2 + $0x6cc] sm:$0xf] }
  0xdc   : > { %2285 = vmatpush.bf16.msra.mxu2 %v3562_v11  ;;  %v3498_v11 = vor.u32 %v4614_v1, %v3495_v2  ;;  %v3463_v41 = vld [vmem:[#allocation2 + $0x218] sm:$0xf0]  ;;  %v3338_v27 = vor.u32 %v4574_v35, %v3335_v36  ;;  %v4722_v6 = vld [vmem:[#allocation2 + $0x5ac] sm:$0xf] }
  0xdd   : > { %2298 = vmatpush.bf16.msra.mxu3 %v3690_v14  ;;  %v5150_v8 = vadd.f32 %v2046_v4, %v2034_v3  ;;  %v3591_v43 = vld [vmem:[#allocation2 + $0x318] sm:$0xf0]  ;;  %v4690_v4 = vld [vmem:[#allocation2 + $0x4ac] sm:$0xf] }
  0xde   : > { %2260 = vmatpush.bf16.msra.mxu0 %v3290_v23  ;;  %v2022_v14 = vpop.f32.mrf.mxu1  ;;  %v3226_v23 = vor.u32 %v4546_v12, %v3223_v31  ;;  %v3959_v49 = vld [vmem:[#allocation2 + $0x5f8] sm:$0xf0]  ;;  %v3594_v28 = vor.u32 %v4638_v42, %v3591_v43  ;;  %v4914_v25 = vld [vmem:[#allocation1 + $0x12] sm:$0xff] }
  0xdf   : > { %2273 = vmatpush.bf16.msra.mxu1 %v3418_v26  ;;  %v3207_v26 = vld [vmem:[#allocation2 + $0x18] sm:$0xf0]  ;;  %v4786_v31 = vld [vmem:[#allocation2 + $0x7ac] sm:$0xf] }
  0xe0   : > { %2286 = vmatpush.bf16.msra.mxu2 %v3546_v30  ;;  %v3354_v30 = vor.u32 %v4578_v13, %v3351_v15  ;;  %v3210_v48 = vor.u32 %v4542_v24, %v3207_v26  ;;  %v4087_v51 = vld [vmem:[#allocation2 + $0x6f8] sm:$0xf0]  ;;  %v4686_v21 = vld [vmem:[#allocation2 + $0x48c] sm:$0xf] }
  0xe1   : > { %2299 = vmatpush.bf16.msra.mxu3 %v3674_v37  ;;  %v4606_v37 = vld [vmem:[#allocation2 + $0x20c] sm:$0xf]  ;;  %v4215_v54 = vld [vmem:[#allocation2 + $0x7f8] sm:$0xf0]  ;;  %v4090_v34 = vor.u32 %v4762_v50, %v4087_v51 }
  0xe2   : > { %2261 = vmatpush.bf16.msra.mxu0 %v3274_v44  ;;  %v2035_v39 = vpop.f32.mrf.mxu2  ;;  %v4218_v59 = vor.u32 %v4794_v53, %v4215_v54  ;;  %v3943_v60 = vld [vmem:[#allocation2 + $0x5d8] sm:$0xf0]  ;;  %v4718_v24 = vld [vmem:[#allocation2 + $0x58c] sm:$0xf] }
  0xe3   : > { %2274 = vmatpush.bf16.msra.mxu1 %v3402_v46  ;;  %v2048_v44 = vpop.f32.mrf.mxu3  ;;  %v3831_v46 = vld [vmem:[#allocation2 + $0x4f8] sm:$0xf0]  ;;  %v4782_v36 = vld [vmem:[#allocation2 + $0x78c] sm:$0xf] }
  0xe4   : > { %2287 = vmatpush.bf16.msra.mxu2 %v3530_v47  ;;  %v4730_v47 = vld [vmem:[#allocation2 + $0x5ec] sm:$0xf]  ;;  %v3834_v29 = vor.u32 %v4698_v45, %v3831_v46  ;;  %v4071_v62 = vld [vmem:[#allocation2 + $0x6d8] sm:$0xf0] }
  0xe5   : > { %2300 = vmatpush.bf16.msra.mxu3 %v3658_v52  ;;  %v3466_v52 = vor.u32 %v4606_v37, %v3463_v41  ;;  %v3962_v55 = vor.u32 %v4730_v47, %v3959_v49  ;;  %v4199_v0 = vld [vmem:[#allocation2 + $0x7d8] sm:$0xf0]  ;;  %v4074_v3 = vor.u32 %v4758_v61, %v4071_v62  ;;  %v4682_v43 = vld [vmem:[#allocation2 + $0x46c] sm:$0xf] }
  0xe6   : > { %2262 = vmatpush.bf16.msra.mxu0 %v3258_v56  ;;  %v4694_v56 = vld [vmem:[#allocation2 + $0x4cc] sm:$0xf]  ;;  %v3799_v5 = vld [vmem:[#allocation2 + $0x4b8] sm:$0xf0] }
  0xe7   : > { %2275 = vmatpush.bf16.msra.mxu1 %v3386_v57  ;;  %v3815_v57 = vld [vmem:[#allocation2 + $0x4d8] sm:$0xf0]  ;;  %v3802_v15 = vor.u32 %v4690_v4, %v3799_v5  ;;  %v4714_v45 = vld [vmem:[#allocation2 + $0x56c] sm:$0xf] }
  0xe8   : > { %2288 = vmatpush.bf16.msra.mxu2 %v3514_v58  ;;  %v4726_v58 = vld [vmem:[#allocation2 + $0x5cc] sm:$0xf]  ;;  %v3818_v1 = vor.u32 %v4694_v56, %v3815_v57  ;;  %v4055_v12 = vld [vmem:[#allocation2 + $0x6b8] sm:$0xf0] }
  0xe9   : > { %2301 = vmatpush.bf16.msra.mxu3 %v3642_v63  ;;  %v4790_v63 = vld [vmem:[#allocation2 + $0x7cc] sm:$0xf]  ;;  %v3946_v2 = vor.u32 %v4726_v58, %v3943_v60  ;;  %v4183_v13 = vld [vmem:[#allocation2 + $0x7b8] sm:$0xf0] }
  0xea   : > { %2263 = vmatpush.bf16.msra.mxu0 %v3242_v7  ;;  %v4202_v7 = vor.u32 %v4790_v63, %v4199_v0  ;;  %v4915_v14 = vld [vmem:[#allocation1] sm:$0xff]  ;;  %v4186_v26 = vor.u32 %v4786_v31, %v4183_v13  ;;  %v4746_v49 = vld [vmem:[#allocation2 + $0x66c] sm:$0xf]  ;;  %v1939_v13 = vperm.slane %v5135_v10, 1 }
  0xeb   : > { %2276 = vmatpush.bf16.msra.mxu1 %v3370_v9  ;;  %v3927_v9 = vld [vmem:[#allocation2 + $0x5b8] sm:$0xf0]  ;;  %v4778_v51 = vld [vmem:[#allocation2 + $0x76c] sm:$0xf] }
  0xec   : > { %2289 = vmatpush.bf16.msra.mxu2 %v3498_v11  ;;  %v4754_v11 = vld [vmem:[#allocation2 + $0x6ac] sm:$0xf]  ;;  %v3930_v19 = vor.u32 %v4722_v6, %v3927_v9  ;;  %v4039_v35 = vld [vmem:[#allocation2 + $0x698] sm:$0xf0] }
  0xed   : > { %2302 = vmatpush.bf16.msra.mxu3 %v3626_v38  ;;  %v4916_v38 = vld [vmem:[#allocation1 + $0x1b] sm:$0xff]  ;;  %v4058_v20 = vor.u32 %v4754_v11, %v4055_v12  ;;  %v4167_v37 = vld [vmem:[#allocation2 + $0x798] sm:$0xf0]  ;;  %v4742_v58 = vld [vmem:[#allocation2 + $0x64c] sm:$0xf] }
  0xee   : > { %2264 = vmatpush.bf16.msra.mxu0 %v3226_v23  ;;  %v3783_v23 = vld [vmem:[#allocation2 + $0x498] sm:$0xf0]  ;;  %v4170_v47 = vor.u32 %v4782_v36, %v4167_v37  ;;  %v4774_v61 = vld [vmem:[#allocation2 + $0x74c] sm:$0xf]  ;;  %v4277_v37 = vld [vmem:[#allocation4 + $0x70] sm:$0xf] }
  0xef   : > { %2277 = vmatpush.bf16.msra.mxu1 %v3354_v30  ;;  %v3911_v30 = vld [vmem:[#allocation2 + $0x598] sm:$0xf0]  ;;  %v3786_v39 = vor.u32 %v4686_v21, %v3783_v23  ;;  %v4706_v5 = vld [vmem:[#allocation2 + $0x52c] sm:$0xf] }
  0xf0   : > { %2290 = vmatpush.bf16.msra.mxu2 %v3482_v33  ;;  %v4750_v33 = vld [vmem:[#allocation2 + $0x68c] sm:$0xf]  ;;  %v3914_v41 = vor.u32 %v4718_v24, %v3911_v30  ;;  %v3767_v44 = vld [vmem:[#allocation2 + $0x478] sm:$0xf0] }
  0xf1   : > { %2303 = vmatpush.bf16.msra.mxu3 %v3610_v40  ;;  %v4042_v42 = vor.u32 %v4750_v33, %v4039_v35  ;;  %v4023_v50 = vld [vmem:[#allocation2 + $0x678] sm:$0xf0]  ;;  %v4738_v9 = vld [vmem:[#allocation2 + $0x62c] sm:$0xf] }
  0xf2   : > { %2265 = vmatpush.bf16.msra.mxu0 %v3210_v48  ;;  %v5152_v40 = vpop.f32.mrf.mxu0  ;;  %v3895_v48 = vld [vmem:[#allocation2 + $0x578] sm:$0xf0]  ;;  %v4026_v54 = vor.u32 %v4746_v49, %v4023_v50  ;;  %v4770_v12 = vld [vmem:[#allocation2 + $0x72c] sm:$0xf] }
  0xf3   : > { %2278 = vmatpush.bf16.msra.mxu1 %v3338_v27  ;;  %v5154_v46 = vpop.f32.mrf.mxu1  ;;  %v4151_v27 = vld [vmem:[#allocation2 + $0x778] sm:$0xf0]  ;;  %v3898_v53 = vor.u32 %v4714_v45, %v3895_v48  ;;  %v4766_v33 = vld [vmem:[#allocation2 + $0x70c] sm:$0xf]  ;;  %v2060_v36 = vadd.f32 %v5152_v40, %v1939_v13  ;;  %v4333_v40 = vld [vmem:[#allocation4 + $0xe0] sm:$0xf] }
  0xf4   : > { %2291 = vmatpush.bf16.msra.mxu2 %v3466_v52  ;;  %v3770_v52 = vor.u32 %v4682_v43, %v3767_v44  ;;  %v4154_v56 = vor.u32 %v4778_v51, %v4151_v27  ;;  %v3879_v57 = vld [vmem:[#allocation2 + $0x558] sm:$0xf0]  ;;  %v4828_v43 = vld [vmem:[#allocation4 + $0xf4] sm:$0xf0]  ;;  %v4269_v51 = vld [vmem:[#allocation4 + $0x60] sm:$0xf] }
  0xf5   : > { %2304 = vmatpush.bf16.msra.mxu3 %v3594_v28  ;;  %2266 = vmatmul.bf16.vlgmr.msra.gmra.mxu0 %v4915_v14  ;;  %v4678_v28 = vld [vmem:[#allocation2 + $0x44c] sm:$0xf]  ;;  %v4135_v62 = vld [vmem:[#allocation2 + $0x758] sm:$0xf0]  ;;  %v2073_v49 = vadd.f32 %v5154_v46, %v2060_v36  ;;  %v4810_v27 = vld [vmem:[#allocation4 + $0x64] sm:$0xf0] }
  0xf6   : > { %2310 = vmatpush.bf16.msrb.mxu0 %v3834_v29  ;;  %2279 = vmatmul.bf16.vlgmr.msra.gmra.mxu1 %v4917_v16  ;;  %v3751_v29 = vld [vmem:[#allocation2 + $0x458] sm:$0xf0]  ;;  %v4325_v46 = vld [vmem:[#allocation4 + $0xd0] sm:$0xf] }
  0xf7   : > { %2323 = vmatpush.bf16.msrb.mxu1 %v3962_v55  ;;  %2292 = vmatmul.bf16.vlgmr.msra.gmra.mxu2 %v4914_v25  ;;  %v4710_v55 = vld [vmem:[#allocation2 + $0x54c] sm:$0xf]  ;;  %v3754_v63 = vor.u32 %v4678_v28, %v3751_v29  ;;  %v3735_v4 = vld [vmem:[#allocation2 + $0x438] sm:$0xf0]  ;;  %v4261_v29 = vld [vmem:[#allocation4 + $0x50] sm:$0xf] }
  0xf8   : > { %2336 = vmatpush.bf16.msrb.mxu2 %v4090_v34  ;;  %2305 = vmatmul.bf16.vlgmr.msra.gmra.mxu3 %v4916_v38  ;;  %v3863_v25 = vld [vmem:[#allocation2 + $0x538] sm:$0xf0]  ;;  %v4670_v38 = vld [vmem:[#allocation2 + $0x40c] sm:$0xf] }
  0xf9   : > { %2349 = vmatpush.bf16.msrb.mxu3 %v4218_v59  ;;  %v4007_v59 = vld [vmem:[#allocation2 + $0x658] sm:$0xf0] }
  0xfa   : > { %2311 = vmatpush.bf16.msrb.mxu0 %v3818_v1  ;;  %v5156_v34 = vpop.f32.mrf.mxu2  ;;  %v2061_v0 = vpop.f32.mrf.mxu0  ;;  %v3882_v1 = vor.u32 %v4710_v55, %v3879_v57  ;;  %v3991_v11 = vld [vmem:[#allocation2 + $0x638] sm:$0xf0]  ;;  %v4808_v55 = vld [vmem:[#allocation4 + $0x54] sm:$0xf0] }
  0xfb   : > { %2324 = vmatpush.bf16.msrb.mxu1 %v3946_v2  ;;  %v5158_v60 = vpop.f32.mrf.mxu3  ;;  %v4010_v2 = vor.u32 %v4742_v58, %v4007_v59  ;;  %v2074_v6 = vpop.f32.mrf.mxu1  ;;  %v4119_v31 = vld [vmem:[#allocation2 + $0x738] sm:$0xf0]  ;;  %v3994_v16 = vor.u32 %v4738_v9, %v3991_v11  ;;  %v4262_v57 = vor.u32 %v4808_v55, %v4261_v29  ;;  %v4844_v0 = vld [vmem:[#allocation4 + $0x174] sm:$0xf0] }
  0xfc   : > { %2337 = vmatpush.bf16.msrb.mxu2 %v4074_v3  ;;  %v4674_v3 = vld [vmem:[#allocation2 + $0x42c] sm:$0xf]  ;;  %v3847_v21 = vld [vmem:[#allocation2 + $0x518] sm:$0xf0]  ;;  %v4122_v24 = vor.u32 %v4770_v12, %v4119_v31  ;;  %v4309_v6 = vld [vmem:[#allocation4 + $0xb0] sm:$0xf] }
  0xfd   : > { %2350 = vmatpush.bf16.msrb.mxu3 %v4202_v7  ;;  %v4138_v7 = vor.u32 %v4774_v61, %v4135_v62  ;;  %v3738_v14 = vor.u32 %v4674_v3, %v3735_v4  ;;  %v3975_v30 = vld [vmem:[#allocation2 + $0x618] sm:$0xf0]  ;;  %v4806_v61 = vld [vmem:[#allocation4 + $0x44] sm:$0xf0]  ;;  %v4245_v4 = vld [vmem:[#allocation4 + $0x30] sm:$0xf] }
  0xfe   : > { %2312 = vmatpush.bf16.msrb.mxu0 %v3802_v15  ;;  %v3866_v15 = vor.u32 %v4706_v5, %v3863_v25  ;;  %v4103_v10 = vld [vmem:[#allocation2 + $0x718] sm:$0xf0]  ;;  %v4822_v62 = vld [vmem:[#allocation4 + $0xc4] sm:$0xf0]  ;;  %v4804_v5 = vld [vmem:[#allocation4 + $0x34] sm:$0xf0] }
  0xff   : > { %2325 = vmatpush.bf16.msrb.mxu1 %v3930_v19  ;;  %v3719_v19 = vld [vmem:[#allocation2 + $0x418] sm:$0xf0]  ;;  %v4842_v25 = vld [vmem:[#allocation4 + $0x164] sm:$0xf0]  ;;  %v4246_v12 = vor.u32 %v4804_v5, %v4245_v4  ;;  %v4357_v5 = vld [vmem:[#allocation4 + $0x110] sm:$0xf] }
 0x100   : > { %2338 = vmatpush.bf16.msrb.mxu2 %v4058_v20  ;;  %v4702_v20 = vld [vmem:[#allocation2 + $0x50c] sm:$0xf]  ;;  %v4279_v29 = vld [vmem:[#allocation4 + $0x78] sm:$0xf0] }
 0x101   : > { %2351 = vmatpush.bf16.msrb.mxu3 %v4186_v26  ;;  %v4734_v26 = vld [vmem:[#allocation2 + $0x60c] sm:$0xf]  ;;  %v3850_v44 = vor.u32 %v4702_v20, %v3847_v21  ;;  %v4818_v20 = vld [vmem:[#allocation4 + $0xa4] sm:$0xf0]  ;;  %v4389_v21 = vld [vmem:[#allocation4 + $0x150] sm:$0xf] }
 0x102   : > { %2313 = vmatpush.bf16.msrb.mxu0 %v3786_v39  ;;  %v2087_v23 = vpop.f32.mrf.mxu2  ;;  %v4812_v39 = vld [vmem:[#allocation4 + $0x74] sm:$0xf0]  ;;  %v3978_v45 = vor.u32 %v4734_v26, %v3975_v30 }
 0x103   : > { %2326 = vmatpush.bf16.msrb.mxu1 %v3914_v41  ;;  %v2100_v35 = vpop.f32.mrf.mxu3  ;;  %v3722_v41 = vor.u32 %v4670_v38, %v3719_v19  ;;  %v4278_v48 = vor.u32 %v4812_v39, %v4277_v37  ;;  %v4802_v38 = vld [vmem:[#allocation4 + $0x24] sm:$0xf0]  ;;  %v4840_v23 = vld [vmem:[#allocation4 + $0x154] sm:$0xf0]  ;;  %v4293_v37 = vld [vmem:[#allocation4 + $0x90] sm:$0xf] }
 0x104   : > { %2339 = vmatpush.bf16.msrb.mxu2 %v4042_v42  ;;  %v4341_v42 = vld [vmem:[#allocation4 + $0xf0] sm:$0xf]  ;;  %v4816_v39 = vld [vmem:[#allocation4 + $0x94] sm:$0xf0] }
 0x105   : > { %2352 = vmatpush.bf16.msrb.mxu3 %v4170_v47  ;;  %v4106_v47 = vor.u32 %v4766_v33, %v4103_v10  ;;  %v4342_v50 = vor.u32 %v4828_v43, %v4341_v42  ;;  %v4229_v33 = vld [vmem:[#allocation4 + $0x10] sm:$0xf]  ;;  %v4800_v10 = vld [vmem:[#allocation4 + $0x14] sm:$0xf0]  ;;  %v4381_v43 = vld [vmem:[#allocation4 + $0x140] sm:$0xf] }
 0x106   : > { %2314 = vmatpush.bf16.msrb.mxu0 %v3770_v52  ;;  %v4826_v52 = vld [vmem:[#allocation4 + $0xe4] sm:$0xf0] }
 0x107   : > { %2327 = vmatpush.bf16.msrb.mxu1 %v3898_v53  ;;  %v4270_v53 = vor.u32 %v4810_v27, %v4269_v51  ;;  %v4334_v28 = vor.u32 %v4826_v52, %v4333_v40  ;;  %v4798_v51 = vld [vmem:[#allocation4 + $0x4] sm:$0xf0]  ;;  %v4294_v27 = vor.u32 %v4816_v39, %v4293_v37  ;;  %v4285_v40 = vld [vmem:[#allocation4 + $0x80] sm:$0xf]  ;;  %v4311_v39 = vld [vmem:[#allocation4 + $0xb8] sm:$0xf0] }
 0x108   : > { %2340 = vmatpush.bf16.msrb.mxu2 %v4026_v54  ;;  %v2086_v54 = vadd.f32 %v5156_v34, %v2073_v49  ;;  %v4253_v34 = vld [vmem:[#allocation4 + $0x40] sm:$0xf]  ;;  %v4230_v49 = vor.u32 %v4800_v10, %v4229_v33  ;;  %v4814_v52 = vld [vmem:[#allocation4 + $0x84] sm:$0xf0]  ;;  %v4819_v10 = vld [vmem:[#allocation4 + $0xb4] sm:$0xf] }
 0x109   : > { %2353 = vmatpush.bf16.msrb.mxu3 %v4154_v56  ;;  %v4824_v56 = vld [vmem:[#allocation4 + $0xd4] sm:$0xf0] }
 0x10a   : > { %2315 = vmatpush.bf16.msrb.mxu0 %v3754_v63  ;;  %v2099_v58 = vadd.f32 %v5158_v60, %v2086_v54  ;;  %v4326_v59 = vor.u32 %v4824_v56, %v4325_v46  ;;  %v4405_v63 = vld [vmem:[#allocation4 + $0x170] sm:$0xf]  ;;  %v4820_v60 = vld [vmem:[#allocation4 + $0xb4] sm:$0xf0] }
 0x10b   : > { %2328 = vmatpush.bf16.msrb.mxu1 %v3882_v1  ;;  %v4406_v1 = vor.u32 %v4844_v0, %v4405_v63  ;;  %v4310_v31 = vor.u32 %v4820_v60, %v4309_v6  ;;  %v4373_v46 = vld [vmem:[#allocation4 + $0x130] sm:$0xf]  ;;  %v4836_v56 = vld [vmem:[#allocation4 + $0x134] sm:$0xf0]  ;;  %v4271_v63 = vld [vmem:[#allocation4 + $0x68] sm:$0xf0] }
 0x10c   : > { %2341 = vmatpush.bf16.msrb.mxu2 %v4010_v2  ;;  %v4365_v0 = vld [vmem:[#allocation4 + $0x120] sm:$0xf]  ;;  %v4832_v6 = vld [vmem:[#allocation4 + $0x114] sm:$0xf0] }
 0x10d   : > { %2354 = vmatpush.bf16.msrb.mxu3 %v4138_v7  ;;  %v4397_v7 = vld [vmem:[#allocation4 + $0x160] sm:$0xf] }
 0x10e   : > { %2316 = vmatpush.bf16.msrb.mxu0 %v3738_v14  ;;  %v4398_v11 = vor.u32 %v4842_v25, %v4397_v7  ;;  %v4237_v14 = vld [vmem:[#allocation4 + $0x20] sm:$0xf]  ;;  %v4807_v7 = vld [vmem:[#allocation4 + $0x54] sm:$0xf]  ;;  %v4263_v25 = vld [vmem:[#allocation4 + $0x58] sm:$0xf0] }
 0x10f   : > { %2329 = vmatpush.bf16.msrb.mxu1 %v3866_v15  ;;  %v4301_v15 = vld [vmem:[#allocation4 + $0xa0] sm:$0xf]  ;;  %v4238_v30 = vor.u32 %v4802_v38, %v4237_v14  ;;  %v4843_v14 = vld [vmem:[#allocation4 + $0x174] sm:$0xf]  ;;  %v4407_v38 = vld [vmem:[#allocation4 + $0x178] sm:$0xf0] }
 0x110   : > { %2342 = vmatpush.bf16.msrb.mxu2 %v3994_v16  ;;  %v4302_v36 = vor.u32 %v4818_v20, %v4301_v15  ;;  %v4266_v15 = vor.u32 %v4807_v7, %v4263_v25  ;;  %v4255_v20 = vld [vmem:[#allocation4 + $0x48] sm:$0xf0] }
 0x111   : > { %2355 = vmatpush.bf16.msrb.mxu3 %v4122_v24  ;;  %v4390_v24 = vor.u32 %v4840_v23, %v4389_v21  ;;  %v4821_v23 = vld [vmem:[#allocation4 + $0xc4] sm:$0xf] }
 0x112   : > { %2317 = vmatpush.bf16.msrb.mxu0 %v3722_v41 }
 0x113   : > { %2330 = vmatpush.bf16.msrb.mxu1 %v3850_v44  ;;  %v4838_v44 = vld [vmem:[#allocation4 + $0x144] sm:$0xf0] }
 0x114   : > { %2343 = vmatpush.bf16.msrb.mxu2 %v3978_v45  ;;  %v4382_v45 = vor.u32 %v4838_v44, %v4381_v43  ;;  %v4399_v43 = vld [vmem:[#allocation4 + $0x168] sm:$0xf0] }
 0x115   : > { %2356 = vmatpush.bf16.msrb.mxu3 %v4106_v47  ;;  %2318 = vmatmul.bf16.vlgmr.msrb.gmra.mxu0 %v5141_v17  ;;  %v4317_v17 = vld [vmem:[#allocation4 + $0xc0] sm:$0xf]  ;;  %v2362_v47 = vmax.f32 %v5150_v8, 0.0  ;;  %v4827_v8 = vld [vmem:[#allocation4 + $0xf4] sm:$0xf] }
 0x116   : > { %2760 = vmatpush.bf16.msra.mxu0 %v4278_v48  ;;  %2331 = vmatmul.bf16.vlgmr.msrb.gmra.mxu1 %v5147_v22  ;;  %v4254_v22 = vor.u32 %v4806_v61, %v4253_v34  ;;  %v4318_v2 = vor.u32 %v4822_v62, %v4317_v17  ;;  %v4286_v34 = vor.u32 %v4814_v52, %v4285_v40  ;;  %v4809_v17 = vld [vmem:[#allocation4 + $0x64] sm:$0xf]  ;;  %v4839_v40 = vld [vmem:[#allocation4 + $0x154] sm:$0xf]  ;;  %v4391_v52 = vld [vmem:[#allocation4 + $0x158] sm:$0xf0] }
 0x117   : > { %2773 = vmatpush.bf16.msra.mxu1 %v4342_v50  ;;  %2344 = vmatmul.bf16.vlgmr.msrb.gmra.mxu2 %v5138_v32  ;;  %v2111_v32 = vpop.f32.mrf.mxu0  ;;  %v4221_v50 = vld [vmem:[#allocation4] sm:$0xf]  ;;  %v4274_v4 = vor.u32 %v4809_v17, %v4271_v63  ;;  %v5184_v63 = vld [vmem:[%s5271_s2] sm:$0xf] }
 0x118   : > { %2357 = vmatmul.bf16.vlgmr.msrb.gmra.mxu3 %v5144_v18  ;;  %v2112_v3 = vadd.f32 %v2111_v32, %v2099_v58  ;;  %v2124_v18 = vpop.f32.mrf.mxu1  ;;  %2786 = vmatpush.bf16.msra.mxu2 %v4406_v1  ;;  %v4374_v58 = vor.u32 %v4836_v56, %v4373_v46  ;;  %v4834_v1 = vld [vmem:[#allocation4 + $0x124] sm:$0xf0]  ;;  %v4335_v32 = vld [vmem:[#allocation4 + $0xe8] sm:$0xf0]  ;;  %v4799_v46 = vld [vmem:[#allocation4 + $0x14] sm:$0xf] }
 0x119   : > { %v4231_v56 = vld [vmem:[#allocation4 + $0x18] sm:$0xf0] }
 0x11a   : > { %2761 = vmatpush.bf16.msra.mxu0 %v4270_v53  ;;  %v2125_v9 = vadd.f32 %v2124_v18, %v2112_v3  ;;  %v2137_v13 = vpop.f32.mrf.mxu2  ;;  %v4811_v53 = vld [vmem:[#allocation4 + $0x74] sm:$0xf]  ;;  %v5175_v18 = vpack.c.bf16 %v2362_v47, %v2362_v47 }
 0x11b   : > { %2774 = vmatpush.bf16.msra.mxu1 %v4334_v28  ;;  %v2150_v19 = vpop.f32.mrf.mxu3  ;;  %v4282_v61 = vor.u32 %v4811_v53, %v4279_v29 }
 0x11c   : > { %2787 = vmatpush.bf16.msra.mxu2 %v4398_v11  ;;  %v2138_v16 = vadd.f32 %v2137_v13, %v2125_v9  ;;  %v4823_v9 = vld [vmem:[#allocation4 + $0xd4] sm:$0xf]  ;;  %v4358_v11 = vor.u32 %v4832_v6, %v4357_v5  ;;  %v4830_v13 = vld [vmem:[#allocation4 + $0x104] sm:$0xf0]  ;;  %v4813_v5 = vld [vmem:[#allocation4 + $0x84] sm:$0xf] }
 0x11d   : > { %v4287_v6 = vld [vmem:[#allocation4 + $0x88] sm:$0xf0] }
 0x11e   : > { %2762 = vmatpush.bf16.msra.mxu0 %v4262_v57  ;;  %v2151_v26 = vadd.f32 %v2150_v19, %v2138_v16  ;;  %v4343_v57 = vld [vmem:[#allocation4 + $0xf8] sm:$0xf0]  ;;  %v4805_v19 = vld [vmem:[#allocation4 + $0x44] sm:$0xf] }
 0x11f   : > { %2775 = vmatpush.bf16.msra.mxu1 %v4326_v59  ;;  %v2113_v35 = vpop.f32.mrf.mxu0  ;;  %v4222_v59 = vor.u32 %v4798_v51, %v4221_v50  ;;  %v4346_v62 = vor.u32 %v4827_v8, %v4343_v57  ;;  %v4817_v50 = vld [vmem:[#allocation4 + $0xa4] sm:$0xf]  ;;  %v4303_v51 = vld [vmem:[#allocation4 + $0xa8] sm:$0xf0]  ;;  %v4815_v8 = vld [vmem:[#allocation4 + $0x94] sm:$0xf] }
 0x120   : > { %v2126_v41 = vpop.f32.mrf.mxu1  ;;  %2788 = vmatpush.bf16.msra.mxu2 %v4390_v24  ;;  %v2363_v42 = vmax.f32 %v2151_v26, 0.0  ;;  %v4319_v24 = vld [vmem:[#allocation4 + $0xc8] sm:$0xf0]  ;;  %v4410_v26 = vor.u32 %v4843_v14, %v4407_v38  ;;  %v4803_v35 = vld [vmem:[#allocation4 + $0x34] sm:$0xf]  ;;  %v4290_v38 = vor.u32 %v4813_v5, %v4287_v6 }
 0x121   : > { %v4322_v33 = vor.u32 %v4821_v23, %v4319_v24  ;;  %v4860_v14 = vld [vmem:[#allocation4 + $0x1f4] sm:$0xf0]  ;;  %v4829_v24 = vld [vmem:[#allocation4 + $0x104] sm:$0xf]  ;;  %v4463_v5 = vld [vmem:[#allocation4 + $0x1e8] sm:$0xf0] }
 0x122   : > { %2763 = vmatpush.bf16.msra.mxu0 %v4254_v22  ;;  %v3028_v48 = vrot.slane %v2363_v42, 7  ;;  %v2139_v54 = vpop.f32.mrf.mxu2  ;;  %v4825_v22 = vld [vmem:[#allocation4 + $0xe4] sm:$0xf]  ;;  %v5173_v3 = vpack.c.bf16 %v2363_v42, %v2363_v42 }
 0x123   : > { %2776 = vmatpush.bf16.msra.mxu1 %v4318_v2  ;;  %v2152_v55 = vpop.f32.mrf.mxu3  ;;  %v4366_v2 = vor.u32 %v4834_v1, %v4365_v0  ;;  %v4338_v60 = vor.u32 %v4825_v22, %v4335_v32  ;;  %v4841_v42 = vld [vmem:[#allocation4 + $0x164] sm:$0xf]  ;;  %v4394_v54 = vor.u32 %v4839_v40, %v4391_v52  ;;  %v1940_v0 = vperm.slane %v5184_v63, 2  ;;  %v4223_v32 = vld [vmem:[#allocation4 + $0x8] sm:$0xf0] }
 0x124   : > { %2789 = vmatpush.bf16.msra.mxu2 %v4382_v45  ;;  %v5171_v28 = vsel %vm3031_vm0, %v2362_v47, %v3028_v48  ;;  %v4402_v44 = vor.u32 %v4841_v42, %v4399_v43  ;;  %v4314_v47 = vor.u32 %v4819_v10, %v4311_v39  ;;  %v4801_v48 = vld [vmem:[#allocation4 + $0x24] sm:$0xf]  ;;  %v4306_v55 = vor.u32 %v4817_v50, %v4303_v51  ;;  %v4858_v10 = vld [vmem:[#allocation4 + $0x1e4] sm:$0xf0]  ;;  %v4453_v39 = vld [vmem:[#allocation4 + $0x1d0] sm:$0xf] }
 0x125   : > { %v4797_v1 = vld [vmem:[#allocation4 + $0x4] sm:$0xf]  ;;  %v4852_v40 = vld [vmem:[#allocation4 + $0x1b4] sm:$0xf0] }
 0x126   : > { %2764 = vmatpush.bf16.msra.mxu0 %v4246_v12  ;;  %v4327_v12 = vld [vmem:[#allocation4 + $0xd8] sm:$0xf0] }
 0x127   : > { %2777 = vmatpush.bf16.msra.mxu1 %v4310_v31  ;;  %v4349_v31 = vld [vmem:[#allocation4 + $0x100] sm:$0xf]  ;;  %v4330_v16 = vor.u32 %v4823_v9, %v4327_v12  ;;  %v4833_v9 = vld [vmem:[#allocation4 + $0x124] sm:$0xf]  ;;  %v4469_v12 = vld [vmem:[#allocation4 + $0x1f0] sm:$0xf] }
 0x128   : > { %2790 = vmatpush.bf16.msra.mxu2 %v4374_v58  ;;  %v4350_v21 = vor.u32 %v4830_v13, %v4349_v31  ;;  %v4295_v58 = vld [vmem:[#allocation4 + $0x98] sm:$0xf0]  ;;  %v4226_v13 = vor.u32 %v4797_v1, %v4223_v32 }
 0x129   : > { %v4298_v22 = vor.u32 %v4815_v8, %v4295_v58  ;;  %v4471_v32 = vld [vmem:[#allocation4 + $0x1f8] sm:$0xf0] }
 0x12a   : > { %2765 = vmatpush.bf16.msra.mxu0 %v4238_v30  ;;  %v4258_v30 = vor.u32 %v4805_v19, %v4255_v20  ;;  %v4831_v19 = vld [vmem:[#allocation4 + $0x114] sm:$0xf]  ;;  %v4359_v20 = vld [vmem:[#allocation4 + $0x118] sm:$0xf0] }
 0x12b   : > { %2778 = vmatpush.bf16.msra.mxu1 %v4302_v36  ;;  %v4247_v36 = vld [vmem:[#allocation4 + $0x38] sm:$0xf0]  ;;  %v4362_v23 = vor.u32 %v4831_v19, %v4359_v20  ;;  %v4851_v19 = vld [vmem:[#allocation4 + $0x1b4] sm:$0xf] }
 0x12c   : > { %2791 = vmatpush.bf16.msra.mxu2 %v4366_v2  ;;  %v4250_v45 = vor.u32 %v4803_v35, %v4247_v36  ;;  %v4835_v2 = vld [vmem:[#allocation4 + $0x134] sm:$0xf]  ;;  %v4461_v36 = vld [vmem:[#allocation4 + $0x1e0] sm:$0xf]  ;;  %v4439_v20 = vld [vmem:[#allocation4 + $0x1b8] sm:$0xf0] }
 0x12e   : > { %2766 = vmatpush.bf16.msra.mxu0 %v4230_v49  ;;  %v4239_v49 = vld [vmem:[#allocation4 + $0x28] sm:$0xf0] }
 0x12f   : > { %2779 = vmatpush.bf16.msra.mxu1 %v4294_v27  ;;  %v4242_v29 = vor.u32 %v4801_v48, %v4239_v49  ;;  %v4854_v48 = vld [vmem:[#allocation4 + $0x1c4] sm:$0xf0] }
 0x130   : > { %2792 = vmatpush.bf16.msra.mxu2 %v4358_v11  ;;  %v4367_v11 = vld [vmem:[#allocation4 + $0x128] sm:$0xf0] }
 0x132   : > { %2767 = vmatpush.bf16.msra.mxu0 %v4222_v59  ;;  %v2163_v37 = vpop.f32.mrf.mxu0 }
 0x133   : > { %2780 = vmatpush.bf16.msra.mxu1 %v4286_v34  ;;  %v5179_v41 = vpop.f32.mrf.mxu1  ;;  %v4837_v34 = vld [vmem:[#allocation4 + $0x144] sm:$0xf]  ;;  %v2164_v31 = vadd.f32 %v2163_v37, %v1940_v0  ;;  %v4462_v37 = vor.u32 %v4858_v10, %v4461_v36  ;;  %v4846_v0 = vld [vmem:[#allocation4 + $0x184] sm:$0xf0]  ;;  %v4847_v36 = vld [vmem:[#allocation4 + $0x194] sm:$0xf] }
 0x134   : > { %2793 = vmatpush.bf16.msra.mxu2 %v4350_v21  ;;  %v4423_v10 = vld [vmem:[#allocation4 + $0x198] sm:$0xf0] }
 0x135   : > { %2768 = vmatmul.bf16.vlgmr.msra.gmra.mxu0 %v5175_v18  ;;  %v2177_v21 = vadd.f32 %v5179_v41, %v2164_v31  ;;  %v4856_v41 = vld [vmem:[#allocation4 + $0x1d4] sm:$0xf0] }
 0x136   : > { %2812 = vmatpush.bf16.msrb.mxu0 %v4282_v61  ;;  %2781 = vmatmul.bf16.vlgmr.msra.gmra.mxu1 %v5173_v3  ;;  %v4383_v61 = vld [vmem:[#allocation4 + $0x148] sm:$0xf0] }
 0x137   : > { %2825 = vmatpush.bf16.msrb.mxu1 %v4346_v62  ;;  %v4386_v17 = vor.u32 %v4837_v34, %v4383_v61  ;;  %v4234_v62 = vor.u32 %v4799_v46, %v4231_v56  ;;  %v4429_v46 = vld [vmem:[#allocation4 + $0x1a0] sm:$0xf]  ;;  %v4850_v56 = vld [vmem:[#allocation4 + $0x1a4] sm:$0xf0]  ;;  %v4421_v34 = vld [vmem:[#allocation4 + $0x190] sm:$0xf] }
 0x138   : > { %2838 = vmatpush.bf16.msrb.mxu2 %v4410_v26  ;;  %v4351_v26 = vld [vmem:[#allocation4 + $0x108] sm:$0xf0]  ;;  %v4430_v58 = vor.u32 %v4850_v56, %v4429_v46  ;;  %v4848_v61 = vld [vmem:[#allocation4 + $0x194] sm:$0xf0] }
 0x13a   : > { %2813 = vmatpush.bf16.msrb.mxu0 %v4274_v4  ;;  %v2189_v27 = vpop.f32.mrf.mxu2  ;;  %v2165_v57 = vpop.f32.mrf.mxu0  ;;  %v4375_v4 = vld [vmem:[#allocation4 + $0x138] sm:$0xf0] }
 0x13b   : > { %2826 = vmatpush.bf16.msrb.mxu1 %v4338_v60  ;;  %v2202_v53 = vpop.f32.mrf.mxu3  ;;  %v2178_v59 = vpop.f32.mrf.mxu1  ;;  %v4378_v7 = vor.u32 %v4835_v2, %v4375_v4  ;;  %v4857_v4 = vld [vmem:[#allocation4 + $0x1e4] sm:$0xf] }
 0x13c   : > { %2839 = vmatpush.bf16.msrb.mxu2 %v4402_v44 }
 0x13e   : > { %2814 = vmatpush.bf16.msrb.mxu0 %v4266_v15  ;;  %v4470_v15 = vor.u32 %v4860_v14, %v4469_v12  ;;  %v4447_v14 = vld [vmem:[#allocation4 + $0x1c8] sm:$0xf0] }
 0x13f   : > { %2827 = vmatpush.bf16.msrb.mxu1 %v4330_v16  ;;  %v4370_v16 = vor.u32 %v4833_v9, %v4367_v11  ;;  %v4455_v9 = vld [vmem:[#allocation4 + $0x1d8] sm:$0xf0] }
 0x140   : > { %2840 = vmatpush.bf16.msrb.mxu2 %v4394_v54  ;;  %2799 = vmatpush.bf16.msra.mxu3 %v4470_v15 }
 0x142   : > { %2815 = vmatpush.bf16.msrb.mxu0 %v4258_v30  ;;  %v2191_v60 = vpop.f32.mrf.mxu2  ;;  %v2190_v30 = vadd.f32 %v2189_v27, %v2177_v21  ;;  %v4437_v27 = vld [vmem:[#allocation4 + $0x1b0] sm:$0xf]  ;;  %v1941_v21 = vperm.slane %v5184_v63, 3 }
 0x143   : > { %2828 = vmatpush.bf16.msrb.mxu1 %v4322_v33  ;;  %v2204_v25 = vpop.f32.mrf.mxu3  ;;  %v4354_v33 = vor.u32 %v4829_v24, %v4351_v26  ;;  %v4466_v60 = vor.u32 %v4857_v4, %v4463_v5 }
 0x144   : > { %2841 = vmatpush.bf16.msrb.mxu2 %v4386_v17  ;;  %v2203_v35 = vadd.f32 %v2202_v53, %v2190_v30  ;;  %2800 = vmatpush.bf16.msra.mxu3 %v4462_v37  ;;  %v4422_v17 = vor.u32 %v4848_v61, %v4421_v34  ;;  %v4855_v25 = vld [vmem:[#allocation4 + $0x1d4] sm:$0xf]  ;;  %v4849_v30 = vld [vmem:[#allocation4 + $0x1a4] sm:$0xf] }
 0x145   : > { %v4458_v11 = vor.u32 %v4855_v25, %v4455_v9  ;;  %v4876_v25 = vld [vmem:[%s5274_s5 + $0x78] sm:$0xff]  ;;  %v4867_v9 = vld [vmem:[%s5274_s5 + $0x30] sm:$0xff] }
 0x146   : > { %2816 = vmatpush.bf16.msrb.mxu0 %v4250_v45  ;;  %v4454_v45 = vor.u32 %v4856_v41, %v4453_v39  ;;  %v4426_v39 = vor.u32 %v4847_v36, %v4423_v10  ;;  %v4845_v41 = vld [vmem:[#allocation4 + $0x184] sm:$0xf] }
 0x147   : > { %2829 = vmatpush.bf16.msrb.mxu1 %v4314_v47  ;;  %v4445_v47 = vld [vmem:[#allocation4 + $0x1c0] sm:$0xf] }
 0x148   : > { %2842 = vmatpush.bf16.msrb.mxu2 %v4378_v7  ;;  %2801 = vmatpush.bf16.msra.mxu3 %v4454_v45 }
 0x14a   : > { %2817 = vmatpush.bf16.msrb.mxu0 %v4242_v29  ;;  %v4438_v29 = vor.u32 %v4852_v40, %v4437_v27 }
 0x14b   : > { %2830 = vmatpush.bf16.msrb.mxu1 %v4306_v55 }
 0x14c   : > { %2843 = vmatpush.bf16.msrb.mxu2 %v4370_v16 }
 0x14e   : > { %2818 = vmatpush.bf16.msrb.mxu0 %v4234_v62  ;;  %v4413_v62 = vld [vmem:[#allocation4 + $0x180] sm:$0xf] }
 0x14f   : > { %2831 = vmatpush.bf16.msrb.mxu1 %v4298_v22  ;;  %v4414_v1 = vor.u32 %v4846_v0, %v4413_v62  ;;  %v4859_v22 = vld [vmem:[#allocation4 + $0x1f4] sm:$0xf] }
 0x150   : > { %2844 = vmatpush.bf16.msrb.mxu2 %v4362_v23  ;;  %v4474_v2 = vor.u32 %v4859_v22, %v4471_v32  ;;  %v4442_v23 = vor.u32 %v4851_v19, %v4439_v20  ;;  %v4862_v20 = vld [vmem:[%s5274_s5 + $0x8] sm:$0xff] }
 0x152   : > { %2819 = vmatpush.bf16.msrb.mxu0 %v4226_v13  ;;  %v2215_v42 = vpop.f32.mrf.mxu0  ;;  %v4853_v13 = vld [vmem:[#allocation4 + $0x1c4] sm:$0xf] }
 0x153   : > { %2832 = vmatpush.bf16.msrb.mxu1 %v4290_v38  ;;  %v2216_v43 = vadd.f32 %v2215_v42, %v2203_v35  ;;  %v2228_v44 = vpop.f32.mrf.mxu1  ;;  %v4450_v15 = vor.u32 %v4853_v13, %v4447_v14  ;;  %v4415_v42 = vld [vmem:[#allocation4 + $0x188] sm:$0xf0]  ;;  %v4865_v13 = vld [vmem:[%s5274_s5 + $0x20] sm:$0xff]  ;;  %v4864_v14 = vld [vmem:[%s5274_s5 + $0x18] sm:$0xff] }
 0x154   : > { %2845 = vmatpush.bf16.msrb.mxu2 %v4354_v33  ;;  %v4431_v33 = vld [vmem:[#allocation4 + $0x1a8] sm:$0xf0] }
 0x155   : > { %2820 = vmatmul.bf16.vlgmr.msrb.gmra.mxu0 %v5175_v18  ;;  %v2229_v18 = vadd.f32 %v2228_v44, %v2216_v43  ;;  %v4434_v35 = vor.u32 %v4849_v30, %v4431_v33  ;;  %v4418_v44 = vor.u32 %v4845_v41, %v4415_v42  ;;  %v4871_v30 = vld [vmem:[%s5274_s5 + $0x50] sm:$0xff]  ;;  %v4870_v33 = vld [vmem:[%s5274_s5 + $0x48] sm:$0xff] }
 0x156   : > { %2833 = vmatmul.bf16.vlgmr.msrb.gmra.mxu1 %v5173_v3  ;;  %v4446_v3 = vor.u32 %v4854_v48, %v4445_v47 }
 0x157   : > { %3010 = vmatpush.bf16.msra.mxu1 %v4876_v25 }
 0x158   : > { %2802 = vmatpush.bf16.msra.mxu3 %v4446_v3 }
 0x15a   : > { %v2241_v49 = vpop.f32.mrf.mxu2  ;;  %v2217_v53 = vpop.f32.mrf.mxu0 }
 0x15b   : > { %v2242_v50 = vadd.f32 %v2241_v49, %v2229_v18  ;;  %v2254_v51 = vpop.f32.mrf.mxu3  ;;  %v2230_v54 = vpop.f32.mrf.mxu1  ;;  %v3038_v53 = vlaneseq }
 0x15c   : > { %2803 = vmatpush.bf16.msra.mxu3 %v4438_v29 }
 0x15d   : > { %v2255_v52 = vadd.f32 %v2254_v51, %v2242_v50  ;;  %vm3040_vm3 = vcmp.lt.s32.totalorder %v3038_v53, 512  ;;  %vm3048_vm4 = vcmp.lt.s32.totalorder %v3038_v53, 256 }
 0x15f   : > { %v5190_v55 = vmax.f32 %v2255_v52, 0.0 }
 0x160   : > { %2804 = vmatpush.bf16.msra.mxu3 %v4430_v58 }
 0x161   : > { %v2368_v8 = vpack.c.bf16 %v5190_v55, %v5190_v55  ;;  %v3029_v29 = vrot.slane %v5190_v55, 6  ;;  %v2434_v55 = vld [vmem:[%s5273_s4] sm:$0x3] }
 0x162   : > { %v2243_v57 = vpop.f32.mrf.mxu2  ;;  %v2756_v34 = vperm.slane %v2434_v55, 0  ;;  %v2757_v32 = vperm.slane %v2434_v55, 1 }
 0x163   : > { %2794 = vmatmul.bf16.vlgmr.msra.gmra.mxu2 %v2368_v8  ;;  %v2256_v59 = vpop.f32.mrf.mxu3 }
 0x164   : > { %2805 = vmatpush.bf16.msra.mxu3 %v4422_v17 }
 0x168   : > { %2806 = vmatpush.bf16.msra.mxu3 %v4414_v1 }
 0x16c   : > { %2851 = vmatpush.bf16.msrb.mxu3 %v4474_v2 }
 0x170   : > { %2852 = vmatpush.bf16.msrb.mxu3 %v4466_v60 }
 0x172   : > { %v2267_v6 = vpop.f32.mrf.mxu0 }
 0x173   : > { %2846 = vmatmul.bf16.vlgmr.msrb.gmra.mxu2 %v2368_v8  ;;  %v2280_v7 = vpop.f32.mrf.mxu1  ;;  %v2268_v37 = vadd.f32 %v2267_v6, %v1941_v21  ;;  %v4874_v21 = vld [vmem:[%s5274_s5 + $0x68] sm:$0xff] }
 0x174   : > { %2853 = vmatpush.bf16.msrb.mxu3 %v4458_v11  ;;  %v4875_v11 = vld [vmem:[%s5274_s5 + $0x70] sm:$0xff] }
 0x175   : > { %v2281_v43 = vadd.f32 %v2280_v7, %v2268_v37  ;;  %v4868_v7 = vld [vmem:[%s5274_s5 + $0x38] sm:$0xff]  ;;  %3011 = vmatpush.bf16.msra.mxu1 %v4875_v11 }
 0x176   : > { %2997 = vmatpush.bf16.msra.mxu0 %v4868_v7 }
 0x178   : > { %2854 = vmatpush.bf16.msrb.mxu3 %v4450_v15  ;;  %v4863_v15 = vld [vmem:[%s5274_s5 + $0x10] sm:$0xff] }
 0x179   : > { %3012 = vmatpush.bf16.msra.mxu1 %v4874_v21 }
 0x17a   : > { %v2293_v12 = vpop.f32.mrf.mxu2  ;;  %v2269_v38 = vpop.f32.mrf.mxu0  ;;  %2998 = vmatpush.bf16.msra.mxu0 %v4867_v9 }
 0x17b   : > { %v2306_v31 = vpop.f32.mrf.mxu3  ;;  %v2282_v16 = vpop.f32.mrf.mxu1  ;;  %v2294_v45 = vadd.f32 %v2293_v12, %v2281_v43  ;;  %v4866_v12 = vld [vmem:[%s5274_s5 + $0x28] sm:$0xff] }
 0x17c   : > { %2855 = vmatpush.bf16.msrb.mxu3 %v4442_v23  ;;  %v4861_v23 = vld [vmem:[%s5274_s5] sm:$0xff] }
 0x17d   : > { %v2307_v63 = vadd.f32 %v2306_v31, %v2294_v45 }
 0x17e   : > { %2999 = vmatpush.bf16.msra.mxu0 %v4866_v12 }
 0x180   : > { %2856 = vmatpush.bf16.msrb.mxu3 %v4434_v35  ;;  %v4869_v35 = vld [vmem:[%s5274_s5 + $0x40] sm:$0xff] }
 0x182   : > { %v2295_v24 = vpop.f32.mrf.mxu2  ;;  %3000 = vmatpush.bf16.msra.mxu0 %v4865_v13 }
 0x183   : > { %v2308_v26 = vpop.f32.mrf.mxu3  ;;  %v4873_v24 = vld [vmem:[%s5274_s5 + $0x60] sm:$0xff] }
 0x184   : > { %2857 = vmatpush.bf16.msrb.mxu3 %v4426_v39  ;;  %3013 = vmatpush.bf16.msra.mxu1 %v4873_v24  ;;  %v4872_v26 = vld [vmem:[%s5274_s5 + $0x58] sm:$0xff] }
 0x186   : > { %3001 = vmatpush.bf16.msra.mxu0 %v4864_v14 }
 0x188   : > { %2858 = vmatpush.bf16.msrb.mxu3 %v4418_v44  ;;  %3014 = vmatpush.bf16.msra.mxu1 %v4872_v26 }
 0x18a   : > { %3002 = vmatpush.bf16.msra.mxu0 %v4863_v15 }
 0x18c   : > { %3015 = vmatpush.bf16.msra.mxu1 %v4871_v30 }
 0x18e   : > { %3003 = vmatpush.bf16.msra.mxu0 %v4862_v20 }
 0x190   : > { %3016 = vmatpush.bf16.msra.mxu1 %v4870_v33 }
 0x192   : > { %v2319_v18 = vpop.f32.mrf.mxu0  ;;  %3004 = vmatpush.bf16.msra.mxu0 %v4861_v23 }
 0x193   : > { %v2332_v47 = vpop.f32.mrf.mxu1  ;;  %v2320_v48 = vadd.f32 %v2319_v18, %v2307_v63 }
 0x194   : > { %3017 = vmatpush.bf16.msra.mxu1 %v4869_v35 }
 0x195   : > { %v2333_v49 = vadd.f32 %v2332_v47, %v2320_v48 }
 0x19a   : > { %v2345_v3 = vpop.f32.mrf.mxu2  ;;  %v2321_v27 = vpop.f32.mrf.mxu0 }
 0x19b   : > { %v2346_v50 = vadd.f32 %v2345_v3, %v2333_v49  ;;  %v2358_v51 = vpop.f32.mrf.mxu3  ;;  %v2334_v40 = vpop.f32.mrf.mxu1 }
 0x19d   : > { %v2359_v52 = vadd.f32 %v2358_v51, %v2346_v50  ;;  %v2900_v51 = vld [vmem:[%s5275_s6] sm:$0x1] }
 0x19f   : > { %v2365_v54 = vmax.f32 %v2359_v52, 0.0 }
 0x1a1   : > { %v2369_v46 = vpack.c.bf16 %v2365_v54, %v2365_v54  ;;  %v3030_v56 = vrot.slane %v2365_v54, 5 }
 0x1a2   : > { %v2347_v8 = vpop.f32.mrf.mxu2 }
 0x1a3   : > { %v3034_v57 = vsel %vm3033_vm1, %v3029_v29, %v3030_v56  ;;  %v2360_v58 = vpop.f32.mrf.mxu3  ;;  %2807 = vmatmul.bf16.vlgmr.msra.gmra.mxu3 %v2369_v46 }
 0x1a4   : > { %v3036_v59 = vsel %vm3035_vm2, %v5171_v28, %v3034_v57 }
 0x1a5   : > { %3042 = vst.msk [vmem:[%s373_s18] sm:$0xf] %vm3040_vm3, %v3036_v59  ;;  %s377_s18 = scalar_lea.vmem %s5277_s8, %s3194_s15 }
 0x1b2   : > { %v2769_v61 = vpop.f32.mrf.mxu0 }
 0x1b3   : > { %v2770_v17 = vadd.f32 %v2769_v61, %v2756_v34  ;;  %v2782_v62 = vpop.f32.mrf.mxu1  ;;  %2859 = vmatmul.bf16.vlgmr.msrb.gmra.mxu3 %v2369_v46 }
 0x1b5   : > { %v2783_v0 = vadd.f32 %v2782_v62, %v2770_v17 }
 0x1ba   : > { %v2771_v1 = vpop.f32.mrf.mxu0 }
 0x1bb   : > { %v2784_v22 = vpop.f32.mrf.mxu1 }
 0x1d2   : > { %v2821_v2 = vpop.f32.mrf.mxu0 }
 0x1d3   : > { %v2822_v4 = vadd.f32 %v2821_v2, %v2757_v32  ;;  %v2834_v5 = vpop.f32.mrf.mxu1 }
 0x1d5   : > { %v2835_v6 = vadd.f32 %v2834_v5, %v2822_v4 }
 0x1da   : > { %v2823_v60 = vpop.f32.mrf.mxu0 }
 0x1db   : > { %v2836_v28 = vpop.f32.mrf.mxu1 }
 0x1e6   : > { %v2795_v31 = vpop.f32.mrf.mxu2 }
 0x1e7   : > { %v2796_v36 = vadd.f32 %v2795_v31, %v2783_v0 }
 0x1ee   : > { %v2797_v38 = vpop.f32.mrf.mxu2 }
 0x1f6   : > { %v2847_v16 = vpop.f32.mrf.mxu2 }
 0x1f7   : > { %v2848_v43 = vadd.f32 %v2847_v16, %v2835_v6 }
 0x1fe   : > { %v2849_v19 = vpop.f32.mrf.mxu2 }
 0x226   : > { %v2808_v10 = vpop.f32.mrf.mxu3 }
 0x227   : > { %v2809_v37 = vadd.f32 %v2808_v10, %v2796_v36 }
 0x229   : > { %v2864_v39 = vmax.f32 %v2809_v37, 0.0 }
 0x22b   : > { %v2866_v41 = vpack.c.bf16 %v2864_v39, %v2864_v39 }
 0x22d   : > { %3005 = vmatmul.bf16.vlgmr.msra.gmra.mxu0 %v2866_v41 }
 0x22e   : > { %v2810_v42 = vpop.f32.mrf.mxu3 }
 0x236   : > { %v2860_v44 = vpop.f32.mrf.mxu3 }
 0x237   : > { %v2861_v45 = vadd.f32 %v2860_v44, %v2848_v43 }
 0x239   : > { %v2865_v63 = vmax.f32 %v2861_v45, 0.0 }
 0x23b   : > { %v2867_v18 = vpack.c.bf16 %v2865_v63, %v2865_v63  ;;  %v3045_v47 = vrot.slane %v2865_v63, 7 }
 0x23d   : > { %v3046_v48 = vsel %vm3031_vm0, %v2864_v39, %v3045_v47  ;;  %3018 = vmatmul.bf16.vlgmr.msra.gmra.mxu1 %v2867_v18 }
 0x23e   : > { %3050 = vst.msk [vmem:[%s377_s18] sm:$0x3] %vm3048_vm4, %v3046_v48  ;;  %v2862_v49 = vpop.f32.mrf.mxu3 }
 0x2aa   : > { %v3006_v3 = vpop.f32.mrf.mxu0 }
 0x2ab   : > { %v3007_v27 = vadd.f32 %v3006_v3, %v2900_v51 }
 0x2b2   : > { %v3008_v50 = vpop.f32.mrf.mxu0 }
 0x2ba   : > { %v3019_v40 = vpop.f32.mrf.mxu1 }
 0x2bb   : > { %v3020_v52 = vadd.f32 %v3019_v40, %v3007_v27 }
 0x2bd   : > { %v3023_v54 = vmax.f32 %v3020_v52, 0.0 }
 0x2bf   : > { %3051 = vst [vmem:[%s380_s23] sm:$0x1] %v3023_v54 }
 0x2c2   : > { %v3021_v53 = vpop.f32.mrf.mxu1 }
 0x2c3 PF: > { %s22_s30 = sadd.s32 1, %s4993_s30  }
 0x2c4   : > { %p19_p7 = scmp.ge.s32.totalorder %s22_s30, 4  }
 0x2c6   :  { %21 = sbr.rel (!%p19_p7) target bundleno = 2 (0x2), region = 111 }
 0x2cb   :  { %3097 = vsyncpa [#allocation3], 1 }
 0x2cc   :  { %3099 = vsyncpa [#allocation3 + $0x1], 1 }
 0x2cd   :  { %3100 = vsyncpa [#allocation5], 1 }

</bundles_post_ra>
